<compile_context>
chip_gen: v7x
topology: tpu7x:2x2x1
jax: 0.10.0
libtpu: 0.0.40
codegen_flags: <defaults>
</compile_context>

<pallas_src>
import functools

import jax
import jax.numpy as jnp
from jax import lax
from jax.experimental import pallas as pl
from jax.experimental.pallas import tpu as pltpu

LANES = 128
SUBLANES = 8
SUB_ROWS = 16                       # register-resident sub-tile height (2 f32 vregs/quantity)
MAX_BLOCK_ROWS = 1024               # 1024*128*4B = 512 KiB per buffer, trivial in VMEM
MIN_PAD_ELEMS = SUB_ROWS * LANES    # smallest slab the kernel processes
EXP_GUARD = 80.0                    # fast path only if every exp argument stays below this


def _softh_kernel(params_ref, tab_ref, x_ref, o_ref, *, n, temperature, num_subtiles):
    """Soft piecewise-constant interpolation over n uniformly spaced breakpoints.

    params_ref: SMEM f32[5]   = [a, step, inv_step, g = temperature*step, fast_flag]
    tab_ref:    SMEM f32[3,n] = [values, exp(+j*g), exp(-j*g)]
    x_ref/o_ref: VMEM f32[block_rows, 128] tiles, processed in 16x128 sub-tiles.
    """
    a = params_ref[0]
    inv_step = params_ref[2]
    g = params_ref[3]
    fast = params_ref[4] > 0.5
    t = jnp.float32(temperature)
    n_max = jnp.float32(n - 1)

    # Hoist loop-invariant SMEM scalar reads (values and the two exp tables).
    vals = [tab_ref[0, j] for j in range(n)]
    cps = [tab_ref[1, j] for j in range(n)]   # exp(+j*g)
    cms = [tab_ref[2, j] for j in range(n)]   # exp(-j*g)

    def load_common(r):
        base = pl.multiple_of(r * SUB_ROWS, SUB_ROWS)
        x = x_ref[pl.ds(base, SUB_ROWS), :]
        u = x - a
        y = t * u
        # Analytic softmax stabilizer: distance to the nearest breakpoint.
        idx = jnp.clip(jnp.floor(u * inv_step + 0.5), 0.0, n_max)
        p = jnp.abs(y - idx * g)              # = temperature * dist(x, nearest bp) >= 0
        return base, y, p

    def finalize(base, num, den):
        inv = pl.reciprocal(den, approx=True)
        inv = inv * (2.0 - den * inv)         # one Newton step -> ~1e-7 rel error
        o_ref[pl.ds(base, SUB_ROWS), :] = num * inv

    @pl.when(fast)
    def _():
        # Factored form: exp(p - |y - j*g|) = min(exp(p-y)*e^{+jg}, exp(p+y)*e^{-jg}).
        # Only 2 EUP exps per sub-tile instead of n; 6 VALU ops per breakpoint.
        def body(r, carry):
            base, y, p = load_common(r)
            e_lo = jnp.exp(p - y)             # pairs with exp(+j*g)  (breakpoints below x)
            e_hi = jnp.exp(p + y)             # pairs with exp(-j*g)  (breakpoints above x)
            num = jnp.zeros_like(y)
            den = jnp.zeros_like(y)
            for j in range(n):
                e = jnp.minimum(e_lo * cps[j], e_hi * cms[j])
                num = num + e * vals[j]
                den = den + e
            finalize(base, num, den)
            return carry

        lax.fori_loop(0, num_subtiles, body, 0)

    @pl.when(jnp.logical_not(fast))
    def _():
        # Exact per-j exp fallback, used only when temperature*range is so large
        # that the factored intermediates could overflow f32.
        def body(r, carry):
            base, y, p = load_common(r)
            num = jnp.zeros_like(y)
            den = jnp.zeros_like(y)
            for j in range(n):
                e = jnp.exp(p - jnp.abs(y - jnp.float32(j) * g))   # stabilized logit <= 0
                num = num + e * vals[j]
                den = den + e
            finalize(base, num, den)
            return carry

        lax.fori_loop(0, num_subtiles, body, 0)


def _pick_block_rows(rows):
    """Sub-tile-aligned block height: large (amortize ~0.35us/step overhead) but
    capped near rows/4 so v7x's two TensorCores see >=4 balanced grid steps."""
    target = min(MAX_BLOCK_ROWS, rows)
    if rows >= 4 * SUB_ROWS:
        target = min(target, -(-rows // 4))
    return max(SUB_ROWS, (target // SUB_ROWS) * SUB_ROWS)


def soft_h_function(x, values, n, temperature=1.5, a=0.0, b=1.0, fixed=False):
    """JAX/Pallas port of SoftHFunction.forward (float32)."""
    x = x.astype(jnp.float32)
    orig_shape = x.shape
    t = jnp.float32(temperature)

    # --- glue: dynamic range fit (part of the module's forward semantics) ---
    x_min = jnp.min(x)
    x_max = jnp.max(x)
    a_v = jnp.float32(a)
    b_v = jnp.float32(b)
    if not fixed:
        a_v = jnp.minimum(a_v, x_min)
        b_v = jnp.maximum(b_v, x_max)

    # Uniform breakpoint spacing; guard degenerate a == b / n == 1 cases.
    step = (b_v - a_v) / jnp.float32(max(n - 1, 1))
    safe = jnp.where(step == 0, jnp.float32(1.0), step)
    inv_step = jnp.where(step == 0, jnp.float32(0.0), jnp.float32(1.0) / safe)
    g = t * step

    # Fast (2-exp) path is exact as long as no factored intermediate can
    # overflow f32; bound every exponent the factored form evaluates.
    zero = jnp.float32(0.0)
    p_max = t * jnp.maximum(jnp.maximum(a_v - x_min, x_max - b_v),
                            jnp.maximum(0.5 * jnp.abs(step), zero))
    y_abs_max = t * jnp.maximum(jnp.maximum(x_max - a_v, a_v - x_min), zero)
    bound = p_max + y_abs_max + t * (b_v - a_v)
    fast_flag = (bound < jnp.float32(EXP_GUARD)).astype(jnp.float32)

    params = jnp.stack([a_v, step, inv_step, g, fast_flag]).astype(jnp.float32)

    values = values.astype(jnp.float32)
    jf = jnp.arange(n, dtype=jnp.float32)
    cp_arg = jnp.minimum(jf * g, jnp.float32(EXP_GUARD + 8.0))  # keep table finite when falling back
    tables = jnp.stack([values, jnp.exp(cp_arg), jnp.exp(-jf * g)])  # (3, n) -> SMEM

    # --- glue: flatten to a lane-dense (rows, 128) slab; minimal padding ---
    total = x.size
    flat = x.reshape(-1)
    pad = (-total) % LANES
    if total + pad < MIN_PAD_ELEMS:   # tiny inputs: pad to one full 16x128 sub-tile
        pad = MIN_PAD_ELEMS - total
    if pad:
        flat = jnp.concatenate([flat, jnp.zeros((pad,), jnp.float32)])
    rows = flat.size // LANES
    x2d = flat.reshape(rows, LANES)

    block_rows = _pick_block_rows(rows)
    num_subtiles = block_rows // SUB_ROWS
    grid = (pl.cdiv(rows, block_rows),)   # ragged last block handled by Pallas masking

    kernel = functools.partial(_softh_kernel, n=n, temperature=float(temperature),
                               num_subtiles=num_subtiles)

    elems = rows * LANES
    cost = pl.CostEstimate(
        flops=(8 * n + 24) * elems,
        transcendentals=3 * elems,
        bytes_accessed=8 * elems,
    )

    out2d = pl.pallas_call(
        kernel,
        out_shape=jax.ShapeDtypeStruct((rows, LANES), jnp.float32),
        grid_spec=pltpu.PrefetchScalarGridSpec(
            num_scalar_prefetch=0,
            grid=grid,
            in_specs=[
                pl.BlockSpec(memory_space=pltpu.MemorySpace.SMEM),    # params[5]
                pl.BlockSpec(memory_space=pltpu.MemorySpace.SMEM),    # tables[3, n]
                pl.BlockSpec((block_rows, LANES), lambda i: (i, 0)),  # x tile
            ],
            out_specs=pl.BlockSpec((block_rows, LANES), lambda i: (i, 0)),
        ),
        compiler_params=pltpu.CompilerParams(
            dimension_semantics=("parallel",),
        ),
        cost_estimate=cost,
    )(params, tables, x2d)

    out_flat = out2d.reshape(-1)
    if pad:
        out_flat = out_flat[:total]
    return out_flat.reshape(orig_shape)


def soft_h_reference(x, values, n, temperature=1.5, a=0.0, b=1.0, fixed=False):
    """Pure-JAX reference mirroring the PyTorch forward."""
    x = x.astype(jnp.float32)
    a_v = jnp.float32(a)
    b_v = jnp.float32(b)
    if not fixed:
        a_v = jnp.minimum(a_v, jnp.min(x))
        b_v = jnp.maximum(b_v, jnp.max(x))
    bp = jnp.linspace(a_v, b_v, n).astype(jnp.float32)
    d = jnp.abs(x[..., None] - bp)
    w = jax.nn.softmax(-temperature * d, axis=-1)
    return jnp.sum(w * values.astype(jnp.float32), axis=-1)


if __name__ == "__main__":
    key = jax.random.PRNGKey(0)
    k_x, k_v = jax.random.split(key)

    N_POINTS = 20
    TEMP = 5.0

    # Deterministic stand-in for nn.Parameter(torch.randn(n))
    values = jax.random.normal(k_v, (N_POINTS,), dtype=jnp.float32)

    # Input: NCHW-shaped tensor of reals (elementwise op, shape-agnostic).
    x = jax.random.normal(k_x, (2, 4, 16, 16), dtype=jnp.float32) * 0.6 + 0.5

    out = soft_h_function(x, values, N_POINTS, temperature=TEMP)
    out = jax.block_until_ready(out)

    ref = soft_h_reference(x, values, N_POINTS, temperature=TEMP)
    assert out.shape == x.shape
    assert jnp.allclose(out, ref, atol=1e-5, rtol=1e-5), (
        f"max err {jnp.max(jnp.abs(out - ref))}"
    )
    print("KERNEL_OK")
</pallas_src>

<mosaic_0001>
module attributes {stable_mosaic.version = 11 : i64} {
  func.func @_softh_kernel(%arg0: i32, %arg1: memref<5xf32, #tpu.memory_space<smem>>, %arg2: memref<3x20xf32, #tpu.memory_space<smem>>, %arg3: memref<16x128xf32, #tpu.memory_space<vmem>>, %arg4: memref<16x128xf32, #tpu.memory_space<vmem>>) attributes {dimension_semantics = [#tpu.dimension_semantics<parallel>], iteration_bounds = array<i64: 1>, scalar_prefetch = 0 : i64, scratch_operands = 0 : i64, tpu.core_type = #tpu.core_type<tc>, window_params = [{transform_indices = @transform_0, window_bounds = array<i64: 5>}, {transform_indices = @transform_1, window_bounds = array<i64: 3, 20>}, {transform_indices = @transform_2, window_bounds = array<i64: 16, 128>}, {transform_indices = @transform_3, window_bounds = array<i64: 16, 128>}]} {
    %c0 = arith.constant 0 : index
    %0 = memref.load %arg1[%c0] : memref<5xf32, #tpu.memory_space<smem>>
    %c2 = arith.constant 2 : index
    %1 = memref.load %arg1[%c2] : memref<5xf32, #tpu.memory_space<smem>>
    %c3 = arith.constant 3 : index
    %2 = memref.load %arg1[%c3] : memref<5xf32, #tpu.memory_space<smem>>
    %c4 = arith.constant 4 : index
    %3 = memref.load %arg1[%c4] : memref<5xf32, #tpu.memory_space<smem>>
    %cst = arith.constant 5.000000e-01 : f32
    %4 = arith.cmpf ogt, %3, %cst : f32
    %c0_0 = arith.constant 0 : index
    %c0_1 = arith.constant 0 : index
    %5 = memref.load %arg2[%c0_0, %c0_1] : memref<3x20xf32, #tpu.memory_space<smem>>
    %c0_2 = arith.constant 0 : index
    %c1 = arith.constant 1 : index
    %6 = memref.load %arg2[%c0_2, %c1] : memref<3x20xf32, #tpu.memory_space<smem>>
    %c0_3 = arith.constant 0 : index
    %c2_4 = arith.constant 2 : index
    %7 = memref.load %arg2[%c0_3, %c2_4] : memref<3x20xf32, #tpu.memory_space<smem>>
    %c0_5 = arith.constant 0 : index
    %c3_6 = arith.constant 3 : index
    %8 = memref.load %arg2[%c0_5, %c3_6] : memref<3x20xf32, #tpu.memory_space<smem>>
    %c0_7 = arith.constant 0 : index
    %c4_8 = arith.constant 4 : index
    %9 = memref.load %arg2[%c0_7, %c4_8] : memref<3x20xf32, #tpu.memory_space<smem>>
    %c0_9 = arith.constant 0 : index
    %c5 = arith.constant 5 : index
    %10 = memref.load %arg2[%c0_9, %c5] : memref<3x20xf32, #tpu.memory_space<smem>>
    %c0_10 = arith.constant 0 : index
    %c6 = arith.constant 6 : index
    %11 = memref.load %arg2[%c0_10, %c6] : memref<3x20xf32, #tpu.memory_space<smem>>
    %c0_11 = arith.constant 0 : index
    %c7 = arith.constant 7 : index
    %12 = memref.load %arg2[%c0_11, %c7] : memref<3x20xf32, #tpu.memory_space<smem>>
    %c0_12 = arith.constant 0 : index
    %c8 = arith.constant 8 : index
    %13 = memref.load %arg2[%c0_12, %c8] : memref<3x20xf32, #tpu.memory_space<smem>>
    %c0_13 = arith.constant 0 : index
    %c9 = arith.constant 9 : index
    %14 = memref.load %arg2[%c0_13, %c9] : memref<3x20xf32, #tpu.memory_space<smem>>
    %c0_14 = arith.constant 0 : index
    %c10 = arith.constant 10 : index
    %15 = memref.load %arg2[%c0_14, %c10] : memref<3x20xf32, #tpu.memory_space<smem>>
    %c0_15 = arith.constant 0 : index
    %c11 = arith.constant 11 : index
    %16 = memref.load %arg2[%c0_15, %c11] : memref<3x20xf32, #tpu.memory_space<smem>>
    %c0_16 = arith.constant 0 : index
    %c12 = arith.constant 12 : index
    %17 = memref.load %arg2[%c0_16, %c12] : memref<3x20xf32, #tpu.memory_space<smem>>
    %c0_17 = arith.constant 0 : index
    %c13 = arith.constant 13 : index
    %18 = memref.load %arg2[%c0_17, %c13] : memref<3x20xf32, #tpu.memory_space<smem>>
    %c0_18 = arith.constant 0 : index
    %c14 = arith.constant 14 : index
    %19 = memref.load %arg2[%c0_18, %c14] : memref<3x20xf32, #tpu.memory_space<smem>>
    %c0_19 = arith.constant 0 : index
    %c15 = arith.constant 15 : index
    %20 = memref.load %arg2[%c0_19, %c15] : memref<3x20xf32, #tpu.memory_space<smem>>
    %c0_20 = arith.constant 0 : index
    %c16 = arith.constant 16 : index
    %21 = memref.load %arg2[%c0_20, %c16] : memref<3x20xf32, #tpu.memory_space<smem>>
    %c0_21 = arith.constant 0 : index
    %c17 = arith.constant 17 : index
    %22 = memref.load %arg2[%c0_21, %c17] : memref<3x20xf32, #tpu.memory_space<smem>>
    %c0_22 = arith.constant 0 : index
    %c18 = arith.constant 18 : index
    %23 = memref.load %arg2[%c0_22, %c18] : memref<3x20xf32, #tpu.memory_space<smem>>
    %c0_23 = arith.constant 0 : index
    %c19 = arith.constant 19 : index
    %24 = memref.load %arg2[%c0_23, %c19] : memref<3x20xf32, #tpu.memory_space<smem>>
    %c1_24 = arith.constant 1 : index
    %c0_25 = arith.constant 0 : index
    %25 = memref.load %arg2[%c1_24, %c0_25] : memref<3x20xf32, #tpu.memory_space<smem>>
    %c1_26 = arith.constant 1 : index
    %c1_27 = arith.constant 1 : index
    %26 = memref.load %arg2[%c1_26, %c1_27] : memref<3x20xf32, #tpu.memory_space<smem>>
    %c1_28 = arith.constant 1 : index
    %c2_29 = arith.constant 2 : index
    %27 = memref.load %arg2[%c1_28, %c2_29] : memref<3x20xf32, #tpu.memory_space<smem>>
    %c1_30 = arith.constant 1 : index
    %c3_31 = arith.constant 3 : index
    %28 = memref.load %arg2[%c1_30, %c3_31] : memref<3x20xf32, #tpu.memory_space<smem>>
    %c1_32 = arith.constant 1 : index
    %c4_33 = arith.constant 4 : index
    %29 = memref.load %arg2[%c1_32, %c4_33] : memref<3x20xf32, #tpu.memory_space<smem>>
    %c1_34 = arith.constant 1 : index
    %c5_35 = arith.constant 5 : index
    %30 = memref.load %arg2[%c1_34, %c5_35] : memref<3x20xf32, #tpu.memory_space<smem>>
    %c1_36 = arith.constant 1 : index
    %c6_37 = arith.constant 6 : index
    %31 = memref.load %arg2[%c1_36, %c6_37] : memref<3x20xf32, #tpu.memory_space<smem>>
    %c1_38 = arith.constant 1 : index
    %c7_39 = arith.constant 7 : index
    %32 = memref.load %arg2[%c1_38, %c7_39] : memref<3x20xf32, #tpu.memory_space<smem>>
    %c1_40 = arith.constant 1 : index
    %c8_41 = arith.constant 8 : index
    %33 = memref.load %arg2[%c1_40, %c8_41] : memref<3x20xf32, #tpu.memory_space<smem>>
    %c1_42 = arith.constant 1 : index
    %c9_43 = arith.constant 9 : index
    %34 = memref.load %arg2[%c1_42, %c9_43] : memref<3x20xf32, #tpu.memory_space<smem>>
    %c1_44 = arith.constant 1 : index
    %c10_45 = arith.constant 10 : index
    %35 = memref.load %arg2[%c1_44, %c10_45] : memref<3x20xf32, #tpu.memory_space<smem>>
    %c1_46 = arith.constant 1 : index
    %c11_47 = arith.constant 11 : index
    %36 = memref.load %arg2[%c1_46, %c11_47] : memref<3x20xf32, #tpu.memory_space<smem>>
    %c1_48 = arith.constant 1 : index
    %c12_49 = arith.constant 12 : index
    %37 = memref.load %arg2[%c1_48, %c12_49] : memref<3x20xf32, #tpu.memory_space<smem>>
    %c1_50 = arith.constant 1 : index
    %c13_51 = arith.constant 13 : index
    %38 = memref.load %arg2[%c1_50, %c13_51] : memref<3x20xf32, #tpu.memory_space<smem>>
    %c1_52 = arith.constant 1 : index
    %c14_53 = arith.constant 14 : index
    %39 = memref.load %arg2[%c1_52, %c14_53] : memref<3x20xf32, #tpu.memory_space<smem>>
    %c1_54 = arith.constant 1 : index
    %c15_55 = arith.constant 15 : index
    %40 = memref.load %arg2[%c1_54, %c15_55] : memref<3x20xf32, #tpu.memory_space<smem>>
    %c1_56 = arith.constant 1 : index
    %c16_57 = arith.constant 16 : index
    %41 = memref.load %arg2[%c1_56, %c16_57] : memref<3x20xf32, #tpu.memory_space<smem>>
    %c1_58 = arith.constant 1 : index
    %c17_59 = arith.constant 17 : index
    %42 = memref.load %arg2[%c1_58, %c17_59] : memref<3x20xf32, #tpu.memory_space<smem>>
    %c1_60 = arith.constant 1 : index
    %c18_61 = arith.constant 18 : index
    %43 = memref.load %arg2[%c1_60, %c18_61] : memref<3x20xf32, #tpu.memory_space<smem>>
    %c1_62 = arith.constant 1 : index
    %c19_63 = arith.constant 19 : index
    %44 = memref.load %arg2[%c1_62, %c19_63] : memref<3x20xf32, #tpu.memory_space<smem>>
    %c2_64 = arith.constant 2 : index
    %c0_65 = arith.constant 0 : index
    %45 = memref.load %arg2[%c2_64, %c0_65] : memref<3x20xf32, #tpu.memory_space<smem>>
    %c2_66 = arith.constant 2 : index
    %c1_67 = arith.constant 1 : index
    %46 = memref.load %arg2[%c2_66, %c1_67] : memref<3x20xf32, #tpu.memory_space<smem>>
    %c2_68 = arith.constant 2 : index
    %c2_69 = arith.constant 2 : index
    %47 = memref.load %arg2[%c2_68, %c2_69] : memref<3x20xf32, #tpu.memory_space<smem>>
    %c2_70 = arith.constant 2 : index
    %c3_71 = arith.constant 3 : index
    %48 = memref.load %arg2[%c2_70, %c3_71] : memref<3x20xf32, #tpu.memory_space<smem>>
    %c2_72 = arith.constant 2 : index
    %c4_73 = arith.constant 4 : index
    %49 = memref.load %arg2[%c2_72, %c4_73] : memref<3x20xf32, #tpu.memory_space<smem>>
    %c2_74 = arith.constant 2 : index
    %c5_75 = arith.constant 5 : index
    %50 = memref.load %arg2[%c2_74, %c5_75] : memref<3x20xf32, #tpu.memory_space<smem>>
    %c2_76 = arith.constant 2 : index
    %c6_77 = arith.constant 6 : index
    %51 = memref.load %arg2[%c2_76, %c6_77] : memref<3x20xf32, #tpu.memory_space<smem>>
    %c2_78 = arith.constant 2 : index
    %c7_79 = arith.constant 7 : index
    %52 = memref.load %arg2[%c2_78, %c7_79] : memref<3x20xf32, #tpu.memory_space<smem>>
    %c2_80 = arith.constant 2 : index
    %c8_81 = arith.constant 8 : index
    %53 = memref.load %arg2[%c2_80, %c8_81] : memref<3x20xf32, #tpu.memory_space<smem>>
    %c2_82 = arith.constant 2 : index
    %c9_83 = arith.constant 9 : index
    %54 = memref.load %arg2[%c2_82, %c9_83] : memref<3x20xf32, #tpu.memory_space<smem>>
    %c2_84 = arith.constant 2 : index
    %c10_85 = arith.constant 10 : index
    %55 = memref.load %arg2[%c2_84, %c10_85] : memref<3x20xf32, #tpu.memory_space<smem>>
    %c2_86 = arith.constant 2 : index
    %c11_87 = arith.constant 11 : index
    %56 = memref.load %arg2[%c2_86, %c11_87] : memref<3x20xf32, #tpu.memory_space<smem>>
    %c2_88 = arith.constant 2 : index
    %c12_89 = arith.constant 12 : index
    %57 = memref.load %arg2[%c2_88, %c12_89] : memref<3x20xf32, #tpu.memory_space<smem>>
    %c2_90 = arith.constant 2 : index
    %c13_91 = arith.constant 13 : index
    %58 = memref.load %arg2[%c2_90, %c13_91] : memref<3x20xf32, #tpu.memory_space<smem>>
    %c2_92 = arith.constant 2 : index
    %c14_93 = arith.constant 14 : index
    %59 = memref.load %arg2[%c2_92, %c14_93] : memref<3x20xf32, #tpu.memory_space<smem>>
    %c2_94 = arith.constant 2 : index
    %c15_95 = arith.constant 15 : index
    %60 = memref.load %arg2[%c2_94, %c15_95] : memref<3x20xf32, #tpu.memory_space<smem>>
    %c2_96 = arith.constant 2 : index
    %c16_97 = arith.constant 16 : index
    %61 = memref.load %arg2[%c2_96, %c16_97] : memref<3x20xf32, #tpu.memory_space<smem>>
    %c2_98 = arith.constant 2 : index
    %c17_99 = arith.constant 17 : index
    %62 = memref.load %arg2[%c2_98, %c17_99] : memref<3x20xf32, #tpu.memory_space<smem>>
    %c2_100 = arith.constant 2 : index
    %c18_101 = arith.constant 18 : index
    %63 = memref.load %arg2[%c2_100, %c18_101] : memref<3x20xf32, #tpu.memory_space<smem>>
    %c2_102 = arith.constant 2 : index
    %c19_103 = arith.constant 19 : index
    %64 = memref.load %arg2[%c2_102, %c19_103] : memref<3x20xf32, #tpu.memory_space<smem>>
    %65 = arith.extui %4 : i1 to i32
    %cst_104 = arith.constant 5.000000e+00 : f32
    %cst_105 = arith.constant 1.900000e+01 : f32
    %c0_i32 = arith.constant 0 : i32
    %66 = arith.cmpi ne, %65, %c0_i32 : i32
    scf.if %66 {
      %c0_i32_109 = arith.constant 0 : i32
      %c16_i32 = arith.constant 16 : i32
      %70 = arith.muli %c0_i32_109, %c16_i32 : i32
      %71 = tpu.assume_multiple %70, 16 : i32
      %72 = arith.index_cast %71 : i32 to index
      %c0_110 = arith.constant 0 : index
      %73 = vector.load %arg3[%72, %c0_110] : memref<16x128xf32, #tpu.memory_space<vmem>>, vector<16x128xf32>
      %74 = vector.broadcast %0 : f32 to vector<16x128xf32>
      %75 = arith.subf %73, %74 : vector<16x128xf32>
      %76 = vector.broadcast %cst_104 : f32 to vector<16x128xf32>
      %77 = arith.mulf %76, %75 : vector<16x128xf32>
      %78 = vector.broadcast %1 : f32 to vector<16x128xf32>
      %79 = arith.mulf %75, %78 : vector<16x128xf32>
      %cst_111 = arith.constant 5.000000e-01 : f32
      %80 = vector.broadcast %cst_111 : f32 to vector<16x128xf32>
      %81 = arith.addf %79, %80 : vector<16x128xf32>
      %82 = math.floor %81 : vector<16x128xf32>
      %cst_112 = arith.constant 0.000000e+00 : f32
      %83 = vector.broadcast %cst_112 : f32 to vector<16x128xf32>
      %84 = arith.maximumf %83, %82 : vector<16x128xf32>
      %85 = vector.broadcast %cst_105 : f32 to vector<16x128xf32>
      %86 = arith.minimumf %85, %84 : vector<16x128xf32>
      %87 = vector.broadcast %2 : f32 to vector<16x128xf32>
      %88 = arith.mulf %86, %87 : vector<16x128xf32>
      %89 = arith.subf %77, %88 : vector<16x128xf32>
      %90 = math.absf %89 : vector<16x128xf32>
      %91 = arith.subf %90, %77 : vector<16x128xf32>
      %92 = math.exp %91 : vector<16x128xf32>
      %93 = arith.addf %90, %77 : vector<16x128xf32>
      %94 = math.exp %93 : vector<16x128xf32>
      %cst_113 = arith.constant 0.000000e+00 : f32
      %95 = vector.broadcast %cst_113 : f32 to vector<16x128xf32>
      %cst_114 = arith.constant 0.000000e+00 : f32
      %96 = vector.broadcast %cst_114 : f32 to vector<16x128xf32>
      %97 = vector.broadcast %25 : f32 to vector<16x128xf32>
      %98 = arith.mulf %92, %97 : vector<16x128xf32>
      %99 = vector.broadcast %45 : f32 to vector<16x128xf32>
      %100 = arith.mulf %94, %99 : vector<16x128xf32>
      %101 = arith.minimumf %98, %100 : vector<16x128xf32>
      %102 = vector.broadcast %5 : f32 to vector<16x128xf32>
      %103 = arith.mulf %101, %102 : vector<16x128xf32>
      %104 = arith.addf %95, %103 : vector<16x128xf32>
      %105 = arith.addf %96, %101 : vector<16x128xf32>
      %106 = vector.broadcast %26 : f32 to vector<16x128xf32>
      %107 = arith.mulf %92, %106 : vector<16x128xf32>
      %108 = vector.broadcast %46 : f32 to vector<16x128xf32>
      %109 = arith.mulf %94, %108 : vector<16x128xf32>
      %110 = arith.minimumf %107, %109 : vector<16x128xf32>
      %111 = vector.broadcast %6 : f32 to vector<16x128xf32>
      %112 = arith.mulf %110, %111 : vector<16x128xf32>
      %113 = arith.addf %104, %112 : vector<16x128xf32>
      %114 = arith.addf %105, %110 : vector<16x128xf32>
      %115 = vector.broadcast %27 : f32 to vector<16x128xf32>
      %116 = arith.mulf %92, %115 : vector<16x128xf32>
      %117 = vector.broadcast %47 : f32 to vector<16x128xf32>
      %118 = arith.mulf %94, %117 : vector<16x128xf32>
      %119 = arith.minimumf %116, %118 : vector<16x128xf32>
      %120 = vector.broadcast %7 : f32 to vector<16x128xf32>
      %121 = arith.mulf %119, %120 : vector<16x128xf32>
      %122 = arith.addf %113, %121 : vector<16x128xf32>
      %123 = arith.addf %114, %119 : vector<16x128xf32>
      %124 = vector.broadcast %28 : f32 to vector<16x128xf32>
      %125 = arith.mulf %92, %124 : vector<16x128xf32>
      %126 = vector.broadcast %48 : f32 to vector<16x128xf32>
      %127 = arith.mulf %94, %126 : vector<16x128xf32>
      %128 = arith.minimumf %125, %127 : vector<16x128xf32>
      %129 = vector.broadcast %8 : f32 to vector<16x128xf32>
      %130 = arith.mulf %128, %129 : vector<16x128xf32>
      %131 = arith.addf %122, %130 : vector<16x128xf32>
      %132 = arith.addf %123, %128 : vector<16x128xf32>
      %133 = vector.broadcast %29 : f32 to vector<16x128xf32>
      %134 = arith.mulf %92, %133 : vector<16x128xf32>
      %135 = vector.broadcast %49 : f32 to vector<16x128xf32>
      %136 = arith.mulf %94, %135 : vector<16x128xf32>
      %137 = arith.minimumf %134, %136 : vector<16x128xf32>
      %138 = vector.broadcast %9 : f32 to vector<16x128xf32>
      %139 = arith.mulf %137, %138 : vector<16x128xf32>
      %140 = arith.addf %131, %139 : vector<16x128xf32>
      %141 = arith.addf %132, %137 : vector<16x128xf32>
      %142 = vector.broadcast %30 : f32 to vector<16x128xf32>
      %143 = arith.mulf %92, %142 : vector<16x128xf32>
      %144 = vector.broadcast %50 : f32 to vector<16x128xf32>
      %145 = arith.mulf %94, %144 : vector<16x128xf32>
      %146 = arith.minimumf %143, %145 : vector<16x128xf32>
      %147 = vector.broadcast %10 : f32 to vector<16x128xf32>
      %148 = arith.mulf %146, %147 : vector<16x128xf32>
      %149 = arith.addf %140, %148 : vector<16x128xf32>
      %150 = arith.addf %141, %146 : vector<16x128xf32>
      %151 = vector.broadcast %31 : f32 to vector<16x128xf32>
      %152 = arith.mulf %92, %151 : vector<16x128xf32>
      %153 = vector.broadcast %51 : f32 to vector<16x128xf32>
      %154 = arith.mulf %94, %153 : vector<16x128xf32>
      %155 = arith.minimumf %152, %154 : vector<16x128xf32>
      %156 = vector.broadcast %11 : f32 to vector<16x128xf32>
      %157 = arith.mulf %155, %156 : vector<16x128xf32>
      %158 = arith.addf %149, %157 : vector<16x128xf32>
      %159 = arith.addf %150, %155 : vector<16x128xf32>
      %160 = vector.broadcast %32 : f32 to vector<16x128xf32>
      %161 = arith.mulf %92, %160 : vector<16x128xf32>
      %162 = vector.broadcast %52 : f32 to vector<16x128xf32>
      %163 = arith.mulf %94, %162 : vector<16x128xf32>
      %164 = arith.minimumf %161, %163 : vector<16x128xf32>
      %165 = vector.broadcast %12 : f32 to vector<16x128xf32>
      %166 = arith.mulf %164, %165 : vector<16x128xf32>
      %167 = arith.addf %158, %166 : vector<16x128xf32>
      %168 = arith.addf %159, %164 : vector<16x128xf32>
      %169 = vector.broadcast %33 : f32 to vector<16x128xf32>
      %170 = arith.mulf %92, %169 : vector<16x128xf32>
      %171 = vector.broadcast %53 : f32 to vector<16x128xf32>
      %172 = arith.mulf %94, %171 : vector<16x128xf32>
      %173 = arith.minimumf %170, %172 : vector<16x128xf32>
      %174 = vector.broadcast %13 : f32 to vector<16x128xf32>
      %175 = arith.mulf %173, %174 : vector<16x128xf32>
      %176 = arith.addf %167, %175 : vector<16x128xf32>
      %177 = arith.addf %168, %173 : vector<16x128xf32>
      %178 = vector.broadcast %34 : f32 to vector<16x128xf32>
      %179 = arith.mulf %92, %178 : vector<16x128xf32>
      %180 = vector.broadcast %54 : f32 to vector<16x128xf32>
      %181 = arith.mulf %94, %180 : vector<16x128xf32>
      %182 = arith.minimumf %179, %181 : vector<16x128xf32>
      %183 = vector.broadcast %14 : f32 to vector<16x128xf32>
      %184 = arith.mulf %182, %183 : vector<16x128xf32>
      %185 = arith.addf %176, %184 : vector<16x128xf32>
      %186 = arith.addf %177, %182 : vector<16x128xf32>
      %187 = vector.broadcast %35 : f32 to vector<16x128xf32>
      %188 = arith.mulf %92, %187 : vector<16x128xf32>
      %189 = vector.broadcast %55 : f32 to vector<16x128xf32>
      %190 = arith.mulf %94, %189 : vector<16x128xf32>
      %191 = arith.minimumf %188, %190 : vector<16x128xf32>
      %192 = vector.broadcast %15 : f32 to vector<16x128xf32>
      %193 = arith.mulf %191, %192 : vector<16x128xf32>
      %194 = arith.addf %185, %193 : vector<16x128xf32>
      %195 = arith.addf %186, %191 : vector<16x128xf32>
      %196 = vector.broadcast %36 : f32 to vector<16x128xf32>
      %197 = arith.mulf %92, %196 : vector<16x128xf32>
      %198 = vector.broadcast %56 : f32 to vector<16x128xf32>
      %199 = arith.mulf %94, %198 : vector<16x128xf32>
      %200 = arith.minimumf %197, %199 : vector<16x128xf32>
      %201 = vector.broadcast %16 : f32 to vector<16x128xf32>
      %202 = arith.mulf %200, %201 : vector<16x128xf32>
      %203 = arith.addf %194, %202 : vector<16x128xf32>
      %204 = arith.addf %195, %200 : vector<16x128xf32>
      %205 = vector.broadcast %37 : f32 to vector<16x128xf32>
      %206 = arith.mulf %92, %205 : vector<16x128xf32>
      %207 = vector.broadcast %57 : f32 to vector<16x128xf32>
      %208 = arith.mulf %94, %207 : vector<16x128xf32>
      %209 = arith.minimumf %206, %208 : vector<16x128xf32>
      %210 = vector.broadcast %17 : f32 to vector<16x128xf32>
      %211 = arith.mulf %209, %210 : vector<16x128xf32>
      %212 = arith.addf %203, %211 : vector<16x128xf32>
      %213 = arith.addf %204, %209 : vector<16x128xf32>
      %214 = vector.broadcast %38 : f32 to vector<16x128xf32>
      %215 = arith.mulf %92, %214 : vector<16x128xf32>
      %216 = vector.broadcast %58 : f32 to vector<16x128xf32>
      %217 = arith.mulf %94, %216 : vector<16x128xf32>
      %218 = arith.minimumf %215, %217 : vector<16x128xf32>
      %219 = vector.broadcast %18 : f32 to vector<16x128xf32>
      %220 = arith.mulf %218, %219 : vector<16x128xf32>
      %221 = arith.addf %212, %220 : vector<16x128xf32>
      %222 = arith.addf %213, %218 : vector<16x128xf32>
      %223 = vector.broadcast %39 : f32 to vector<16x128xf32>
      %224 = arith.mulf %92, %223 : vector<16x128xf32>
      %225 = vector.broadcast %59 : f32 to vector<16x128xf32>
      %226 = arith.mulf %94, %225 : vector<16x128xf32>
      %227 = arith.minimumf %224, %226 : vector<16x128xf32>
      %228 = vector.broadcast %19 : f32 to vector<16x128xf32>
      %229 = arith.mulf %227, %228 : vector<16x128xf32>
      %230 = arith.addf %221, %229 : vector<16x128xf32>
      %231 = arith.addf %222, %227 : vector<16x128xf32>
      %232 = vector.broadcast %40 : f32 to vector<16x128xf32>
      %233 = arith.mulf %92, %232 : vector<16x128xf32>
      %234 = vector.broadcast %60 : f32 to vector<16x128xf32>
      %235 = arith.mulf %94, %234 : vector<16x128xf32>
      %236 = arith.minimumf %233, %235 : vector<16x128xf32>
      %237 = vector.broadcast %20 : f32 to vector<16x128xf32>
      %238 = arith.mulf %236, %237 : vector<16x128xf32>
      %239 = arith.addf %230, %238 : vector<16x128xf32>
      %240 = arith.addf %231, %236 : vector<16x128xf32>
      %241 = vector.broadcast %41 : f32 to vector<16x128xf32>
      %242 = arith.mulf %92, %241 : vector<16x128xf32>
      %243 = vector.broadcast %61 : f32 to vector<16x128xf32>
      %244 = arith.mulf %94, %243 : vector<16x128xf32>
      %245 = arith.minimumf %242, %244 : vector<16x128xf32>
      %246 = vector.broadcast %21 : f32 to vector<16x128xf32>
      %247 = arith.mulf %245, %246 : vector<16x128xf32>
      %248 = arith.addf %239, %247 : vector<16x128xf32>
      %249 = arith.addf %240, %245 : vector<16x128xf32>
      %250 = vector.broadcast %42 : f32 to vector<16x128xf32>
      %251 = arith.mulf %92, %250 : vector<16x128xf32>
      %252 = vector.broadcast %62 : f32 to vector<16x128xf32>
      %253 = arith.mulf %94, %252 : vector<16x128xf32>
      %254 = arith.minimumf %251, %253 : vector<16x128xf32>
      %255 = vector.broadcast %22 : f32 to vector<16x128xf32>
      %256 = arith.mulf %254, %255 : vector<16x128xf32>
      %257 = arith.addf %248, %256 : vector<16x128xf32>
      %258 = arith.addf %249, %254 : vector<16x128xf32>
      %259 = vector.broadcast %43 : f32 to vector<16x128xf32>
      %260 = arith.mulf %92, %259 : vector<16x128xf32>
      %261 = vector.broadcast %63 : f32 to vector<16x128xf32>
      %262 = arith.mulf %94, %261 : vector<16x128xf32>
      %263 = arith.minimumf %260, %262 : vector<16x128xf32>
      %264 = vector.broadcast %23 : f32 to vector<16x128xf32>
      %265 = arith.mulf %263, %264 : vector<16x128xf32>
      %266 = arith.addf %257, %265 : vector<16x128xf32>
      %267 = arith.addf %258, %263 : vector<16x128xf32>
      %268 = vector.broadcast %44 : f32 to vector<16x128xf32>
      %269 = arith.mulf %92, %268 : vector<16x128xf32>
      %270 = vector.broadcast %64 : f32 to vector<16x128xf32>
      %271 = arith.mulf %94, %270 : vector<16x128xf32>
      %272 = arith.minimumf %269, %271 : vector<16x128xf32>
      %273 = vector.broadcast %24 : f32 to vector<16x128xf32>
      %274 = arith.mulf %272, %273 : vector<16x128xf32>
      %275 = arith.addf %266, %274 : vector<16x128xf32>
      %276 = arith.addf %267, %272 : vector<16x128xf32>
      %277 = tpu.reciprocal %276 {approx = true} : vector<16x128xf32> -> vector<16x128xf32>
      %278 = arith.mulf %276, %277 : vector<16x128xf32>
      %cst_115 = arith.constant 2.000000e+00 : f32
      %279 = vector.broadcast %cst_115 : f32 to vector<16x128xf32>
      %280 = arith.subf %279, %278 : vector<16x128xf32>
      %281 = arith.mulf %277, %280 : vector<16x128xf32>
      %282 = arith.mulf %275, %281 : vector<16x128xf32>
      %283 = arith.index_cast %71 : i32 to index
      %c0_116 = arith.constant 0 : index
      %284 = vector.load %arg4[%283, %c0_116] : memref<16x128xf32, #tpu.memory_space<vmem>>, vector<16x128xf32>
      tpu.vector_store %arg4[%283, %c0_116], %282 {strides = array<i32>} : memref<16x128xf32, #tpu.memory_space<vmem>>, vector<16x128xf32>,
      %c1_i32 = arith.constant 1 : i32
    } else {
    }
    %true = arith.constant true
    %67 = arith.xori %4, %true : i1
    %68 = arith.extui %67 : i1 to i32
    %cst_106 = arith.constant 5.000000e+00 : f32
    %cst_107 = arith.constant 1.900000e+01 : f32
    %c0_i32_108 = arith.constant 0 : i32
    %69 = arith.cmpi ne, %68, %c0_i32_108 : i32
    scf.if %69 {
      %c0_i32_109 = arith.constant 0 : i32
      %c16_i32 = arith.constant 16 : i32
      %70 = arith.muli %c0_i32_109, %c16_i32 : i32
      %71 = tpu.assume_multiple %70, 16 : i32
      %72 = arith.index_cast %71 : i32 to index
      %c0_110 = arith.constant 0 : index
      %73 = vector.load %arg3[%72, %c0_110] : memref<16x128xf32, #tpu.memory_space<vmem>>, vector<16x128xf32>
      %74 = vector.broadcast %0 : f32 to vector<16x128xf32>
      %75 = arith.subf %73, %74 : vector<16x128xf32>
      %76 = vector.broadcast %cst_106 : f32 to vector<16x128xf32>
      %77 = arith.mulf %76, %75 : vector<16x128xf32>
      %78 = vector.broadcast %1 : f32 to vector<16x128xf32>
      %79 = arith.mulf %75, %78 : vector<16x128xf32>
      %cst_111 = arith.constant 5.000000e-01 : f32
      %80 = vector.broadcast %cst_111 : f32 to vector<16x128xf32>
      %81 = arith.addf %79, %80 : vector<16x128xf32>
      %82 = math.floor %81 : vector<16x128xf32>
      %cst_112 = arith.constant 0.000000e+00 : f32
      %83 = vector.broadcast %cst_112 : f32 to vector<16x128xf32>
      %84 = arith.maximumf %83, %82 : vector<16x128xf32>
      %85 = vector.broadcast %cst_107 : f32 to vector<16x128xf32>
      %86 = arith.minimumf %85, %84 : vector<16x128xf32>
      %87 = vector.broadcast %2 : f32 to vector<16x128xf32>
      %88 = arith.mulf %86, %87 : vector<16x128xf32>
      %89 = arith.subf %77, %88 : vector<16x128xf32>
      %90 = math.absf %89 : vector<16x128xf32>
      %cst_113 = arith.constant 0.000000e+00 : f32
      %91 = vector.broadcast %cst_113 : f32 to vector<16x128xf32>
      %cst_114 = arith.constant 0.000000e+00 : f32
      %92 = vector.broadcast %cst_114 : f32 to vector<16x128xf32>
      %cst_115 = arith.constant 0.000000e+00 : f32
      %93 = arith.mulf %cst_115, %2 : f32
      %94 = vector.broadcast %93 : f32 to vector<16x128xf32>
      %95 = arith.subf %77, %94 : vector<16x128xf32>
      %96 = math.absf %95 : vector<16x128xf32>
      %97 = arith.subf %90, %96 : vector<16x128xf32>
      %98 = math.exp %97 : vector<16x128xf32>
      %99 = vector.broadcast %5 : f32 to vector<16x128xf32>
      %100 = arith.mulf %98, %99 : vector<16x128xf32>
      %101 = arith.addf %91, %100 : vector<16x128xf32>
      %102 = arith.addf %92, %98 : vector<16x128xf32>
      %cst_116 = arith.constant 1.000000e+00 : f32
      %103 = arith.mulf %cst_116, %2 : f32
      %104 = vector.broadcast %103 : f32 to vector<16x128xf32>
      %105 = arith.subf %77, %104 : vector<16x128xf32>
      %106 = math.absf %105 : vector<16x128xf32>
      %107 = arith.subf %90, %106 : vector<16x128xf32>
      %108 = math.exp %107 : vector<16x128xf32>
      %109 = vector.broadcast %6 : f32 to vector<16x128xf32>
      %110 = arith.mulf %108, %109 : vector<16x128xf32>
      %111 = arith.addf %101, %110 : vector<16x128xf32>
      %112 = arith.addf %102, %108 : vector<16x128xf32>
      %cst_117 = arith.constant 2.000000e+00 : f32
      %113 = arith.mulf %cst_117, %2 : f32
      %114 = vector.broadcast %113 : f32 to vector<16x128xf32>
      %115 = arith.subf %77, %114 : vector<16x128xf32>
      %116 = math.absf %115 : vector<16x128xf32>
      %117 = arith.subf %90, %116 : vector<16x128xf32>
      %118 = math.exp %117 : vector<16x128xf32>
      %119 = vector.broadcast %7 : f32 to vector<16x128xf32>
      %120 = arith.mulf %118, %119 : vector<16x128xf32>
      %121 = arith.addf %111, %120 : vector<16x128xf32>
      %122 = arith.addf %112, %118 : vector<16x128xf32>
      %cst_118 = arith.constant 3.000000e+00 : f32
      %123 = arith.mulf %cst_118, %2 : f32
      %124 = vector.broadcast %123 : f32 to vector<16x128xf32>
      %125 = arith.subf %77, %124 : vector<16x128xf32>
      %126 = math.absf %125 : vector<16x128xf32>
      %127 = arith.subf %90, %126 : vector<16x128xf32>
      %128 = math.exp %127 : vector<16x128xf32>
      %129 = vector.broadcast %8 : f32 to vector<16x128xf32>
      %130 = arith.mulf %128, %129 : vector<16x128xf32>
      %131 = arith.addf %121, %130 : vector<16x128xf32>
      %132 = arith.addf %122, %128 : vector<16x128xf32>
      %cst_119 = arith.constant 4.000000e+00 : f32
      %133 = arith.mulf %cst_119, %2 : f32
      %134 = vector.broadcast %133 : f32 to vector<16x128xf32>
      %135 = arith.subf %77, %134 : vector<16x128xf32>
      %136 = math.absf %135 : vector<16x128xf32>
      %137 = arith.subf %90, %136 : vector<16x128xf32>
      %138 = math.exp %137 : vector<16x128xf32>
      %139 = vector.broadcast %9 : f32 to vector<16x128xf32>
      %140 = arith.mulf %138, %139 : vector<16x128xf32>
      %141 = arith.addf %131, %140 : vector<16x128xf32>
      %142 = arith.addf %132, %138 : vector<16x128xf32>
      %cst_120 = arith.constant 5.000000e+00 : f32
      %143 = arith.mulf %cst_120, %2 : f32
      %144 = vector.broadcast %143 : f32 to vector<16x128xf32>
      %145 = arith.subf %77, %144 : vector<16x128xf32>
      %146 = math.absf %145 : vector<16x128xf32>
      %147 = arith.subf %90, %146 : vector<16x128xf32>
      %148 = math.exp %147 : vector<16x128xf32>
      %149 = vector.broadcast %10 : f32 to vector<16x128xf32>
      %150 = arith.mulf %148, %149 : vector<16x128xf32>
      %151 = arith.addf %141, %150 : vector<16x128xf32>
      %152 = arith.addf %142, %148 : vector<16x128xf32>
      %cst_121 = arith.constant 6.000000e+00 : f32
      %153 = arith.mulf %cst_121, %2 : f32
      %154 = vector.broadcast %153 : f32 to vector<16x128xf32>
      %155 = arith.subf %77, %154 : vector<16x128xf32>
      %156 = math.absf %155 : vector<16x128xf32>
      %157 = arith.subf %90, %156 : vector<16x128xf32>
      %158 = math.exp %157 : vector<16x128xf32>
      %159 = vector.broadcast %11 : f32 to vector<16x128xf32>
      %160 = arith.mulf %158, %159 : vector<16x128xf32>
      %161 = arith.addf %151, %160 : vector<16x128xf32>
      %162 = arith.addf %152, %158 : vector<16x128xf32>
      %cst_122 = arith.constant 7.000000e+00 : f32
      %163 = arith.mulf %cst_122, %2 : f32
      %164 = vector.broadcast %163 : f32 to vector<16x128xf32>
      %165 = arith.subf %77, %164 : vector<16x128xf32>
      %166 = math.absf %165 : vector<16x128xf32>
      %167 = arith.subf %90, %166 : vector<16x128xf32>
      %168 = math.exp %167 : vector<16x128xf32>
      %169 = vector.broadcast %12 : f32 to vector<16x128xf32>
      %170 = arith.mulf %168, %169 : vector<16x128xf32>
      %171 = arith.addf %161, %170 : vector<16x128xf32>
      %172 = arith.addf %162, %168 : vector<16x128xf32>
      %cst_123 = arith.constant 8.000000e+00 : f32
      %173 = arith.mulf %cst_123, %2 : f32
      %174 = vector.broadcast %173 : f32 to vector<16x128xf32>
      %175 = arith.subf %77, %174 : vector<16x128xf32>
      %176 = math.absf %175 : vector<16x128xf32>
      %177 = arith.subf %90, %176 : vector<16x128xf32>
      %178 = math.exp %177 : vector<16x128xf32>
      %179 = vector.broadcast %13 : f32 to vector<16x128xf32>
      %180 = arith.mulf %178, %179 : vector<16x128xf32>
      %181 = arith.addf %171, %180 : vector<16x128xf32>
      %182 = arith.addf %172, %178 : vector<16x128xf32>
      %cst_124 = arith.constant 9.000000e+00 : f32
      %183 = arith.mulf %cst_124, %2 : f32
      %184 = vector.broadcast %183 : f32 to vector<16x128xf32>
      %185 = arith.subf %77, %184 : vector<16x128xf32>
      %186 = math.absf %185 : vector<16x128xf32>
      %187 = arith.subf %90, %186 : vector<16x128xf32>
      %188 = math.exp %187 : vector<16x128xf32>
      %189 = vector.broadcast %14 : f32 to vector<16x128xf32>
      %190 = arith.mulf %188, %189 : vector<16x128xf32>
      %191 = arith.addf %181, %190 : vector<16x128xf32>
      %192 = arith.addf %182, %188 : vector<16x128xf32>
      %cst_125 = arith.constant 1.000000e+01 : f32
      %193 = arith.mulf %cst_125, %2 : f32
      %194 = vector.broadcast %193 : f32 to vector<16x128xf32>
      %195 = arith.subf %77, %194 : vector<16x128xf32>
      %196 = math.absf %195 : vector<16x128xf32>
      %197 = arith.subf %90, %196 : vector<16x128xf32>
      %198 = math.exp %197 : vector<16x128xf32>
      %199 = vector.broadcast %15 : f32 to vector<16x128xf32>
      %200 = arith.mulf %198, %199 : vector<16x128xf32>
      %201 = arith.addf %191, %200 : vector<16x128xf32>
      %202 = arith.addf %192, %198 : vector<16x128xf32>
      %cst_126 = arith.constant 1.100000e+01 : f32
      %203 = arith.mulf %cst_126, %2 : f32
      %204 = vector.broadcast %203 : f32 to vector<16x128xf32>
      %205 = arith.subf %77, %204 : vector<16x128xf32>
      %206 = math.absf %205 : vector<16x128xf32>
      %207 = arith.subf %90, %206 : vector<16x128xf32>
      %208 = math.exp %207 : vector<16x128xf32>
      %209 = vector.broadcast %16 : f32 to vector<16x128xf32>
      %210 = arith.mulf %208, %209 : vector<16x128xf32>
      %211 = arith.addf %201, %210 : vector<16x128xf32>
      %212 = arith.addf %202, %208 : vector<16x128xf32>
      %cst_127 = arith.constant 1.200000e+01 : f32
      %213 = arith.mulf %cst_127, %2 : f32
      %214 = vector.broadcast %213 : f32 to vector<16x128xf32>
      %215 = arith.subf %77, %214 : vector<16x128xf32>
      %216 = math.absf %215 : vector<16x128xf32>
      %217 = arith.subf %90, %216 : vector<16x128xf32>
      %218 = math.exp %217 : vector<16x128xf32>
      %219 = vector.broadcast %17 : f32 to vector<16x128xf32>
      %220 = arith.mulf %218, %219 : vector<16x128xf32>
      %221 = arith.addf %211, %220 : vector<16x128xf32>
      %222 = arith.addf %212, %218 : vector<16x128xf32>
      %cst_128 = arith.constant 1.300000e+01 : f32
      %223 = arith.mulf %cst_128, %2 : f32
      %224 = vector.broadcast %223 : f32 to vector<16x128xf32>
      %225 = arith.subf %77, %224 : vector<16x128xf32>
      %226 = math.absf %225 : vector<16x128xf32>
      %227 = arith.subf %90, %226 : vector<16x128xf32>
      %228 = math.exp %227 : vector<16x128xf32>
      %229 = vector.broadcast %18 : f32 to vector<16x128xf32>
      %230 = arith.mulf %228, %229 : vector<16x128xf32>
      %231 = arith.addf %221, %230 : vector<16x128xf32>
      %232 = arith.addf %222, %228 : vector<16x128xf32>
      %cst_129 = arith.constant 1.400000e+01 : f32
      %233 = arith.mulf %cst_129, %2 : f32
      %234 = vector.broadcast %233 : f32 to vector<16x128xf32>
      %235 = arith.subf %77, %234 : vector<16x128xf32>
      %236 = math.absf %235 : vector<16x128xf32>
      %237 = arith.subf %90, %236 : vector<16x128xf32>
      %238 = math.exp %237 : vector<16x128xf32>
      %239 = vector.broadcast %19 : f32 to vector<16x128xf32>
      %240 = arith.mulf %238, %239 : vector<16x128xf32>
      %241 = arith.addf %231, %240 : vector<16x128xf32>
      %242 = arith.addf %232, %238 : vector<16x128xf32>
      %cst_130 = arith.constant 1.500000e+01 : f32
      %243 = arith.mulf %cst_130, %2 : f32
      %244 = vector.broadcast %243 : f32 to vector<16x128xf32>
      %245 = arith.subf %77, %244 : vector<16x128xf32>
      %246 = math.absf %245 : vector<16x128xf32>
      %247 = arith.subf %90, %246 : vector<16x128xf32>
      %248 = math.exp %247 : vector<16x128xf32>
      %249 = vector.broadcast %20 : f32 to vector<16x128xf32>
      %250 = arith.mulf %248, %249 : vector<16x128xf32>
      %251 = arith.addf %241, %250 : vector<16x128xf32>
      %252 = arith.addf %242, %248 : vector<16x128xf32>
      %cst_131 = arith.constant 1.600000e+01 : f32
      %253 = arith.mulf %cst_131, %2 : f32
      %254 = vector.broadcast %253 : f32 to vector<16x128xf32>
      %255 = arith.subf %77, %254 : vector<16x128xf32>
      %256 = math.absf %255 : vector<16x128xf32>
      %257 = arith.subf %90, %256 : vector<16x128xf32>
      %258 = math.exp %257 : vector<16x128xf32>
      %259 = vector.broadcast %21 : f32 to vector<16x128xf32>
      %260 = arith.mulf %258, %259 : vector<16x128xf32>
      %261 = arith.addf %251, %260 : vector<16x128xf32>
      %262 = arith.addf %252, %258 : vector<16x128xf32>
      %cst_132 = arith.constant 1.700000e+01 : f32
      %263 = arith.mulf %cst_132, %2 : f32
      %264 = vector.broadcast %263 : f32 to vector<16x128xf32>
      %265 = arith.subf %77, %264 : vector<16x128xf32>
      %266 = math.absf %265 : vector<16x128xf32>
      %267 = arith.subf %90, %266 : vector<16x128xf32>
      %268 = math.exp %267 : vector<16x128xf32>
      %269 = vector.broadcast %22 : f32 to vector<16x128xf32>
      %270 = arith.mulf %268, %269 : vector<16x128xf32>
      %271 = arith.addf %261, %270 : vector<16x128xf32>
      %272 = arith.addf %262, %268 : vector<16x128xf32>
      %cst_133 = arith.constant 1.800000e+01 : f32
      %273 = arith.mulf %cst_133, %2 : f32
      %274 = vector.broadcast %273 : f32 to vector<16x128xf32>
      %275 = arith.subf %77, %274 : vector<16x128xf32>
      %276 = math.absf %275 : vector<16x128xf32>
      %277 = arith.subf %90, %276 : vector<16x128xf32>
      %278 = math.exp %277 : vector<16x128xf32>
      %279 = vector.broadcast %23 : f32 to vector<16x128xf32>
      %280 = arith.mulf %278, %279 : vector<16x128xf32>
      %281 = arith.addf %271, %280 : vector<16x128xf32>
      %282 = arith.addf %272, %278 : vector<16x128xf32>
      %cst_134 = arith.constant 1.900000e+01 : f32
      %283 = arith.mulf %cst_134, %2 : f32
      %284 = vector.broadcast %283 : f32 to vector<16x128xf32>
      %285 = arith.subf %77, %284 : vector<16x128xf32>
      %286 = math.absf %285 : vector<16x128xf32>
      %287 = arith.subf %90, %286 : vector<16x128xf32>
      %288 = math.exp %287 : vector<16x128xf32>
      %289 = vector.broadcast %24 : f32 to vector<16x128xf32>
      %290 = arith.mulf %288, %289 : vector<16x128xf32>
      %291 = arith.addf %281, %290 : vector<16x128xf32>
      %292 = arith.addf %282, %288 : vector<16x128xf32>
      %293 = tpu.reciprocal %292 {approx = true} : vector<16x128xf32> -> vector<16x128xf32>
      %294 = arith.mulf %292, %293 : vector<16x128xf32>
      %cst_135 = arith.constant 2.000000e+00 : f32
      %295 = vector.broadcast %cst_135 : f32 to vector<16x128xf32>
      %296 = arith.subf %295, %294 : vector<16x128xf32>
      %297 = arith.mulf %293, %296 : vector<16x128xf32>
      %298 = arith.mulf %291, %297 : vector<16x128xf32>
      %299 = arith.index_cast %71 : i32 to index
      %c0_136 = arith.constant 0 : index
      %300 = vector.load %arg4[%299, %c0_136] : memref<16x128xf32, #tpu.memory_space<vmem>>, vector<16x128xf32>
      tpu.vector_store %arg4[%299, %c0_136], %298 {strides = array<i32>} : memref<16x128xf32, #tpu.memory_space<vmem>>, vector<16x128xf32>,
      %c1_i32 = arith.constant 1 : i32
    } else {
    }
    return
  }
  func.func @transform_0(%arg0: i32) -> i32 {
    %c0_i32 = arith.constant 0 : i32
    %c0_i32_0 = arith.constant 0 : i32
    return %c0_i32 : i32
  }
  func.func @transform_1(%arg0: i32) -> (i32, i32) {
    %c0_i32 = arith.constant 0 : i32
    %c0_i32_0 = arith.constant 0 : i32
    %c0_i32_1 = arith.constant 0 : i32
    return %c0_i32, %c0_i32_0 : i32, i32
  }
  func.func @transform_2(%arg0: i32) -> (i32, i32) {
    %c0_i32 = arith.constant 0 : i32
    %c0_i32_0 = arith.constant 0 : i32
    return %arg0, %c0_i32 : i32, i32
  }
  func.func @transform_3(%arg0: i32) -> (i32, i32) {
    %c0_i32 = arith.constant 0 : i32
    %c0_i32_0 = arith.constant 0 : i32
    return %arg0, %c0_i32 : i32, i32
  }
}

</mosaic_0001>

<bundles_post_ra>
// kernel: tpu_custom_call.1
= control target key start
LH: loop header
LB: loop body
LE: loop exit
PB: predicated region body
PF: predicated region fallthrough
CT: control target
= control target key end

     0   :  { %s1852_s0 = inlined_call_operand.hbm [shape: f32[5], index: 0, kind: input, shape index: {}]   ;;  %s1853_s1 = inlined_call_operand.hbm [shape: f32[3,20], index: 1, kind: input, shape index: {}]   ;;  %s1854_s2 = inlined_call_operand.hbm [shape: f32[16,128], index: 2, kind: input, shape index: {}]   ;;  %s1855_s3 = inlined_call_operand.hbm [shape: f32[16,128], index: 3, kind: output, shape index: {}]  }
   0x1   :  { %1916 = sst [smem:[#allocation65_spill]] %s1855_s3 }
   0x2   :  { %8 = vsyncpa [#allocation5], 0 }
   0x3   :  { %9 = vsyncpa [#allocation7], 0 }
   0x4   :  { %10 = vsyncpa [#allocation3], 0 }
   0x5   :  { %11 = vsyncpa [#allocation4], 0  ;;  %s1068_s14 = scalar_lea.hbm %s1852_s0, 16 }
   0x6   :  { %p1069_p0 = scmp.ne.s32.totalorder %s1852_s0, %s1068_s14  ;;  %p1072_p1 = scmp.lt.u32.totalorder %s1068_s14, %s1852_s0 }
   0x8   :  { %p1074_p2 = pnand %p1072_p1, %p1069_p0 }
   0xa   :  { %1077 = shalt.err (!%p1074_p2)
}
   0xb   :  { %s1140_s19 = smov [#allocation2]   ;;  %s1078_s24 = scalar_lea.hbm %s1853_s1, 64 }
   0xc   :  { %19 = dma.hbm_to_smem %s1852_s0, 16, %s1140_s19, [#allocation5]  }
   0xd   :  { %p1079_p3 = scmp.ne.s32.totalorder %s1853_s1, %s1078_s24  ;;  %p1082_p4 = scmp.lt.u32.totalorder %s1078_s24, %s1853_s1 }
   0xf   :  { %p1084_p5 = pnand %p1082_p4, %p1079_p3 }
  0x11   :  { %1087 = shalt.err (!%p1084_p5)
}
  0x12   :  { %s1141_s29 = smov [#allocation6]   ;;  %s1142_s0 = smov [#allocation8]  }
  0x13   :  { %27 = dma.hbm_to_smem %s1853_s1, 64, %s1141_s29, [#allocation7]  }
  0x14   :  { %s33_s5 = sshll.u32 %s1142_s0, 4  ;;  %s1088_s8 = scalar_lea.hbm %s1854_s2, 256  ;;  %s34_s5 = int_to_ptr.vmem [resolvable:$true] %s33_s5 }
  0x15   :  { %p1089_p6 = scmp.ne.s32.totalorder %s1854_s2, %s1088_s8  ;;  %p1092_p7 = scmp.lt.u32.totalorder %s1088_s8, %s1854_s2 }
  0x17   :  { %p1094_p8 = pnand %p1092_p7, %p1089_p6 }
  0x19   :  { %1097 = shalt.err (!%p1094_p8)
}
  0x1a   :  { %s1098_s13 = scalar_lea.vmem %s34_s5, 256  ;;  %p1103_p10 = scmp.lt.s32.totalorder %s34_s5, %s34_s5 }
  0x1b   :  { %p1099_p9 = scmp.ne.s32.totalorder %s34_s5, %s1098_s13  ;;  %p1104_p11 = scmp.lt.s32.totalorder %s1098_s13, %s1098_s13 }
  0x1d   :  { %p1105_p12 = por %p1104_p11, %p1103_p10 }
  0x1f   :  { %p1106_p13 = pnand %p1105_p12, %p1099_p9 }
  0x21   :  { %1109 = shalt.err (!%p1106_p13)
}
  0x22   :  { %s1856_s1 = smov 128   ;;  %s1857_s14 = smov 8  }
  0x23   :  { %39 = dma.hbm_to_vmem [thread:$0]  %s1854_s2, 256, %s34_s5, [#allocation3], %s1856_s1, %s1856_s1, %s1857_s14  }
  0x24   :  { %1132 = dma.done.wait [#allocation5], 16  }
  0x25   :  { %1133 = vsyncadd [#allocation5], 4294967280 }
  0x26   :  { %1134 = dma.done.wait [#allocation7], 64  }
  0x27   :  { %1135 = vsyncadd [#allocation7], 4294967232 }
  0x28   :  { %1136 = dma.done.wait [#allocation3], 256  }
  0x29   :  { %1137 = vsyncadd [#allocation3], 4294967040 }
  0x2a   :  { %49 = sfence }
  0x2b   :  { %s1205_s17 = sld [smem:[#allocation2]]  ;;  %s1207_s18 = sld [smem:[#allocation2 + $0x2]] }
  0x2c   :  { %s1209_s19 = sld [smem:[#allocation2 + $0x3]]  ;;  %s1211_s20 = sld [smem:[#allocation2 + $0x4]] }
  0x2d   :  { %s1213_s21 = sld [smem:[#allocation6]]  ;;  %s1215_s22 = sld [smem:[#allocation6 + $0x1]] }
  0x2e   :  { %s1217_s2 = sld [smem:[#allocation6 + $0x2]]  ;;  %s1219_s23 = sld [smem:[#allocation6 + $0x3]] }
  0x2f   :  { %s1221_s24 = sld [smem:[#allocation6 + $0x4]]  ;;  %s1223_s25 = sld [smem:[#allocation6 + $0x5]] }
  0x30   :  { %s1225_s26 = sld [smem:[#allocation6 + $0x6]]  ;;  %s1227_s27 = sld [smem:[#allocation6 + $0x7]] }
  0x31   :  { %1917 = sst [smem:[#allocation14_spill]] %s1205_s17  ;;  %s1231_s29 = sld [smem:[#allocation6 + $0x9]] }
  0x32   :  { %1918 = sst [smem:[#allocation15_spill]] %s1207_s18  ;;  %s1229_s28 = sld [smem:[#allocation6 + $0x8]] }
  0x33   :  { %1919 = sst [smem:[#allocation16_spill]] %s1209_s19  ;;  %p54_p0 = scmp.gt.f32.partialorder %s1211_s20, 0.5 }
  0x34   :  { %1920 = sst [smem:[#allocation17_spill]] %s1211_s20  ;;  %s1234_s30 = sld [smem:[#allocation6 + $0xa]]  ;;  %v118_v0 = vld [vmem:[#allocation8] sm:$0xff] (%p54_p0)  ;;  %v119_v1 = vld [vmem:[#allocation8 + $0x8] sm:$0xff] (%p54_p0)  ;;  %v120_v2 = vstv (%p54_p0), %s1205_s17  ;;  %v125_v3 = vstv (%p54_p0), %s1207_s18  ;;  %v136_v14 = vstv (%p54_p0), %s1209_s19  ;;  %v163_v31 = vstv (%p54_p0), %s1213_s21 }
  0x35   :  { %1921 = sst [smem:[#allocation18_spill]] %s1213_s21  ;;  %s1236_s4 = sld [smem:[#allocation6 + $0xb]]  ;;  %v121_v4 = vsub.f32 (%p54_p0), %v118_v0, %v120_v2  ;;  %v122_v5 = vsub.f32 (%p54_p0), %v119_v1, %v120_v2  ;;  %v178_v38 = vstv (%p54_p0), %s1215_s22  ;;  %v193_v41 = vstv (%p54_p0), %s1217_s2 }
  0x36   :  { %1922 = sst [smem:[#allocation19_spill]] %s1215_s22  ;;  %s1238_s0 = sld [smem:[#allocation6 + $0xc]]  ;;  %v208_v44 = vstv (%p54_p0), %s1219_s23  ;;  %v223_v47 = vstv (%p54_p0), %s1221_s24 }
  0x37   :  { %1923 = sst [smem:[#allocation20_spill]] %s1219_s23  ;;  %s1240_s5 = sld [smem:[#allocation6 + $0xd]]  ;;  %v126_v6 = vmul.f32 (%p54_p0), %v125_v3, %v121_v4  ;;  %v127_v7 = vmul.f32 (%p54_p0), %v125_v3, %v122_v5  ;;  %v123_v15 = vmul.f32 (%p54_p0), 5.0, %v121_v4  ;;  %v124_v16 = vmul.f32 (%p54_p0), 5.0, %v122_v5 }
  0x38   :  { %1924 = sst [smem:[#allocation21_spill]] %s1221_s24  ;;  %s1242_s6 = sld [smem:[#allocation6 + $0xe]] }
  0x39   :  { %1925 = sst [smem:[#allocation22_spill]] %s1223_s25  ;;  %s1244_s7 = sld [smem:[#allocation6 + $0xf]]  ;;  %v128_v8 = vadd.f32 (%p54_p0), 0.5, %v126_v6  ;;  %v129_v9 = vadd.f32 (%p54_p0), 0.5, %v127_v7 }
  0x3a   :  { %1926 = sst [smem:[#allocation23_spill]] %s1225_s26  ;;  %s1246_s8 = sld [smem:[#allocation6 + $0x10]] }
  0x3b   :  { %1927 = sst [smem:[#allocation24_spill]] %s1227_s27  ;;  %s1248_s9 = sld [smem:[#allocation6 + $0x11]]  ;;  %v130_v10 = vfloor.f32 (%p54_p0), %v128_v8  ;;  %v131_v11 = vfloor.f32 (%p54_p0), %v129_v9 }
  0x3c   :  { %1928 = sst [smem:[#allocation25_spill]] %s1229_s28  ;;  %s1250_s10 = sld [smem:[#allocation6 + $0x12]] }
  0x3d   :  { %1929 = sst [smem:[#allocation26_spill]] %s1231_s29  ;;  %s1252_s11 = sld [smem:[#allocation6 + $0x13]]  ;;  %v132_v12 = vmax.f32 (%p54_p0), %v130_v10, 0.0  ;;  %v133_v13 = vmax.f32 (%p54_p0), %v131_v11, 0.0 }
  0x3e   :  { %1930 = sst [smem:[#allocation27_spill]] %s1234_s30  ;;  %s1254_s12 = sld [smem:[#allocation6 + $0x80]] }
  0x3f   :  { %1931 = sst [smem:[#allocation28_spill]] %s1236_s4  ;;  %s1256_s13 = sld [smem:[#allocation6 + $0x81]]  ;;  %v134_v17 = vmin.f32 (%p54_p0), %v132_v12, 19.0  ;;  %v135_v18 = vmin.f32 (%p54_p0), %v133_v13, 19.0 }
  0x40   :  { %1932 = sst [smem:[#allocation29_spill]] %s1238_s0  ;;  %s1258_s15 = sld [smem:[#allocation6 + $0x82]] }
  0x41   :  { %1933 = sst [smem:[#allocation30_spill]] %s1240_s5  ;;  %s1260_s16 = sld [smem:[#allocation6 + $0x83]]  ;;  %v137_v19 = vmul.f32 (%p54_p0), %v136_v14, %v134_v17  ;;  %v138_v20 = vmul.f32 (%p54_p0), %v136_v14, %v135_v18 }
  0x42   :  { %1934 = sst [smem:[#allocation31_spill]] %s1242_s6  ;;  %s1262_s1 = sld [smem:[#allocation6 + $0x84]] }
  0x43   :  { %1935 = sst [smem:[#allocation32_spill]] %s1244_s7  ;;  %s1264_s14 = sld [smem:[#allocation6 + $0x85]]  ;;  %v139_v21 = vsub.f32 (%p54_p0), %v123_v15, %v137_v19  ;;  %v140_v22 = vsub.f32 (%p54_p0), %v124_v16, %v138_v20 }
  0x44   :  { %1936 = sst [smem:[#allocation33_spill]] %s1246_s8  ;;  %s1266_s3 = sld [smem:[#allocation6 + $0x86]]  ;;  %v155_v29 = vstv (%p54_p0), %s1254_s12 }
  0x45   :  { %1937 = sst [smem:[#allocation34_spill]] %s1248_s9  ;;  %s1268_s8 = sld [smem:[#allocation6 + $0x87]]  ;;  %v141_v23 = vand.u32 (%p54_p0), 2147483647, %v139_v21  ;;  %v142_v24 = vand.u32 (%p54_p0), 2147483647, %v140_v22  ;;  %v170_v32 = vstv (%p54_p0), %s1256_s13 }
  0x46   :  { %1938 = sst [smem:[#allocation35_spill]] %s1250_s10  ;;  %s1270_s9 = sld [smem:[#allocation6 + $0x88]]  ;;  %v185_v39 = vstv (%p54_p0), %s1258_s15 }
  0x47   :  { %1939 = sst [smem:[#allocation36_spill]] %s1252_s11  ;;  %s1272_s10 = sld [smem:[#allocation6 + $0x89]]  ;;  %v143_v25 = vsub.f32 (%p54_p0), %v141_v23, %v123_v15  ;;  %v144_v26 = vsub.f32 (%p54_p0), %v142_v24, %v124_v16  ;;  %v149_v27 = vadd.f32 (%p54_p0), %v141_v23, %v123_v15  ;;  %v150_v28 = vadd.f32 (%p54_p0), %v142_v24, %v124_v16 }
  0x48   :  { %1940 = sst [smem:[#allocation37_spill]] %s1262_s1  ;;  %s1274_s11 = sld [smem:[#allocation6 + $0x8a]]  ;;  %v200_v42 = vstv (%p54_p0), %s1260_s16  ;;  %v215_v45 = vstv (%p54_p0), %s1262_s1 }
  0x49   :  { %1941 = sst [smem:[#allocation38_spill]] %s1264_s14  ;;  %s1276_s7 = sld [smem:[#allocation6 + $0x8b]]  ;;  %v145_v33 = vmul.f32 (%p54_p0), 1.442695, %v143_v25  ;;  %v147_v34 = vmul.f32 (%p54_p0), 1.442695, %v144_v26  ;;  %v230_v48 = vstv (%p54_p0), %s1264_s14 }
  0x4a   :  { %1942 = sst [smem:[#allocation39_spill]] %s1266_s3  ;;  %s1278_s6 = sld [smem:[#allocation6 + $0x8c]]  ;;  %v151_v35 = vmul.f32 (%p54_p0), 1.442695, %v149_v27  ;;  %v153_v37 = vmul.f32 (%p54_p0), 1.442695, %v150_v28 }
  0x4b   :  { %1943 = sst [smem:[#allocation40_spill]] %s1268_s8  ;;  %s1280_s5 = sld [smem:[#allocation6 + $0x8d]]  ;;  %972 = vpow2.f32 (%p54_p0), %v145_v33 }
  0x4c   :  { %1944 = sst [smem:[#allocation41_spill]] %s1270_s9  ;;  %s1282_s0 = sld [smem:[#allocation6 + $0x8e]]  ;;  %974 = vpow2.f32 (%p54_p0), %v147_v34 }
  0x4d   :  { %1945 = sst [smem:[#allocation42_spill]] %s1272_s10  ;;  %s1284_s4 = sld [smem:[#allocation6 + $0x8f]]  ;;  %976 = vpow2.f32 (%p54_p0), %v151_v35 }
  0x4e   :  { %1946 = sst [smem:[#allocation43_spill]] %s1274_s11  ;;  %s1286_s30 = sld [smem:[#allocation6 + $0x90]]  ;;  %978 = vpow2.f32 (%p54_p0), %v153_v37 }
  0x4f   :  { %1947 = sst [smem:[#allocation44_spill]] %s1276_s7  ;;  %s1288_s29 = sld [smem:[#allocation6 + $0x91]] }
  0x50   :  { %1948 = sst [smem:[#allocation45_spill]] %s1278_s6  ;;  %s1290_s28 = sld [smem:[#allocation6 + $0x92]] }
  0x51   :  { %1949 = sst [smem:[#allocation46_spill]] %s1280_s5  ;;  %s1292_s9 = sld [smem:[#allocation6 + $0x93]] }
  0x52   :  { %1950 = sst [smem:[#allocation47_spill]] %s1282_s0  ;;  %s1294_s10 = sld [smem:[#allocation6 + $0x100]] }
  0x53   :  { %1951 = sst [smem:[#allocation48_spill]] %s1284_s4  ;;  %s1296_s11 = sld [smem:[#allocation6 + $0x101]] }
  0x54   :  { %1952 = sst [smem:[#allocation49_spill]] %s1286_s30  ;;  %s1298_s7 = sld [smem:[#allocation6 + $0x102]] }
  0x55   :  { %1953 = sst [smem:[#allocation50_spill]] %s1288_s29  ;;  %s1300_s6 = sld [smem:[#allocation6 + $0x103]]  ;;  %v1383_v13 = vpop.eup (%p54_p0), %972 }
  0x56   :  { %1954 = sst [smem:[#allocation51_spill]] %s1290_s28  ;;  %s1302_s5 = sld [smem:[#allocation6 + $0x104]]  ;;  %v1389_v18 = vpop.eup (%p54_p0), %974  ;;  %v156_v19 = vmul.f32 (%p54_p0), %v1383_v13, %v155_v29  ;;  %v171_v20 = vmul.f32 (%p54_p0), %v1383_v13, %v170_v32  ;;  %v186_v21 = vmul.f32 (%p54_p0), %v1383_v13, %v185_v39  ;;  %v201_v22 = vmul.f32 (%p54_p0), %v1383_v13, %v200_v42 }
  0x57   :  { %1955 = sst [smem:[#allocation52_spill]] %s1292_s9  ;;  %s1304_s0 = sld [smem:[#allocation6 + $0x105]]  ;;  %v1397_v23 = vpop.eup (%p54_p0), %976  ;;  %v157_v24 = vmul.f32 (%p54_p0), %v1389_v18, %v155_v29  ;;  %v172_v25 = vmul.f32 (%p54_p0), %v1389_v18, %v170_v32  ;;  %v187_v26 = vmul.f32 (%p54_p0), %v1389_v18, %v185_v39  ;;  %v202_v27 = vmul.f32 (%p54_p0), %v1389_v18, %v200_v42 }
  0x58   :  { %s1306_s4 = sld [smem:[#allocation6 + $0x106]]  ;;  %s1308_s30 = sld [smem:[#allocation6 + $0x107]]  ;;  %v158_v30 = vstv (%p54_p0), %s1294_s10  ;;  %v1405_v28 = vpop.eup (%p54_p0), %978 }
  0x59   :  { %1956 = sst [smem:[#allocation53_spill]] %s1296_s11  ;;  %s1310_s29 = sld [smem:[#allocation6 + $0x108]]  ;;  %v173_v36 = vstv (%p54_p0), %s1296_s11  ;;  %v159_v33 = vmul.f32 (%p54_p0), %v1397_v23, %v158_v30  ;;  %v160_v32 = vmul.f32 (%p54_p0), %v1405_v28, %v158_v30 }
  0x5a   :  { %1957 = sst [smem:[#allocation54_spill]] %s1298_s7  ;;  %s1312_s28 = sld [smem:[#allocation6 + $0x109]]  ;;  %v188_v40 = vstv (%p54_p0), %s1298_s7  ;;  %v174_v34 = vmul.f32 (%p54_p0), %v1397_v23, %v173_v36  ;;  %v175_v37 = vmul.f32 (%p54_p0), %v1405_v28, %v173_v36 }
  0x5b   :  { %s1314_s9 = sld [smem:[#allocation6 + $0x10a]]  ;;  %s1316_s27 = sld [smem:[#allocation6 + $0x10b]]  ;;  %v203_v43 = vstv (%p54_p0), %s1300_s6  ;;  %v189_v35 = vmul.f32 (%p54_p0), %v1397_v23, %v188_v40  ;;  %v190_v39 = vmul.f32 (%p54_p0), %v1405_v28, %v188_v40  ;;  %v161_v17 = vmin.f32 (%p54_p0), %v156_v19, %v159_v33 }
  0x5c   :  { %1958 = sst [smem:[#allocation55_spill]] %s1302_s5  ;;  %s1318_s8 = sld [smem:[#allocation6 + $0x10c]]  ;;  %v218_v46 = vstv (%p54_p0), %s1302_s5  ;;  %v204_v29 = vmul.f32 (%p54_p0), %v1397_v23, %v203_v43  ;;  %v205_v42 = vmul.f32 (%p54_p0), %v1405_v28, %v203_v43  ;;  %v176_v14 = vmin.f32 (%p54_p0), %v171_v20, %v174_v34 }
  0x5d   :  { %1959 = sst [smem:[#allocation56_spill]] %s1304_s0  ;;  %s1320_s26 = sld [smem:[#allocation6 + $0x10d]]  ;;  %v191_v16 = vmin.f32 (%p54_p0), %v186_v21, %v189_v35  ;;  %v162_v15 = vmin.f32 (%p54_p0), %v157_v24, %v160_v32  ;;  %v177_v12 = vmin.f32 (%p54_p0), %v172_v25, %v175_v37  ;;  %v192_v30 = vmin.f32 (%p54_p0), %v187_v26, %v190_v39 }
  0x5e   :  { %1960 = sst [smem:[#allocation57_spill]] %s1306_s4  ;;  %s1322_s3 = sld [smem:[#allocation6 + $0x10e]]  ;;  %v206_v10 = vmin.f32 (%p54_p0), %v201_v22, %v204_v29  ;;  %v207_v7 = vmin.f32 (%p54_p0), %v202_v27, %v205_v42  ;;  %v164_v36 = vmul.f32 (%p54_p0), %v163_v31, %v161_v17  ;;  %v179_v11 = vmul.f32 (%p54_p0), %v178_v38, %v176_v14 }
  0x5f   :  { %1961 = sst [smem:[#allocation58_spill]] %s1308_s30  ;;  %s1324_s25 = sld [smem:[#allocation6 + $0x10f]]  ;;  %v183_v40 = vadd.f32 (%p54_p0), %v176_v14, %v161_v17  ;;  %v194_v43 = vmul.f32 (%p54_p0), %v193_v41, %v191_v16  ;;  %v165_v19 = vmul.f32 (%p54_p0), %v163_v31, %v162_v15  ;;  %v180_v20 = vmul.f32 (%p54_p0), %v178_v38, %v177_v12 }
  0x60   :  { %1962 = sst [smem:[#allocation59_spill]] %s1310_s29  ;;  %s1326_s0 = sld [smem:[#allocation6 + $0x110]]  ;;  %v293_v61 = vstv (%p54_p0), %s1312_s28  ;;  %v184_v21 = vadd.f32 (%p54_p0), %v177_v12, %v162_v15  ;;  %v195_v22 = vmul.f32 (%p54_p0), %v193_v41, %v192_v30  ;;  %v181_v24 = vadd.f32 (%p54_p0), %v179_v11, %v164_v36 }
  0x61   :  { %s1328_s4 = sld [smem:[#allocation6 + $0x111]]  ;;  %s1330_s30 = sld [smem:[#allocation6 + $0x112]]  ;;  %v308_v0 = vstv (%p54_p0), %s1314_s9  ;;  %v323_v3 = vstv (%p54_p0), %s1316_s27  ;;  %v198_v25 = vadd.f32 (%p54_p0), %v191_v16, %v183_v40  ;;  %v209_v26 = vmul.f32 (%p54_p0), %v208_v44, %v206_v10 }
  0x62   :  { %s1332_s29 = sld [smem:[#allocation6 + $0x113]]  ;;  %s1968_s19 = sld [smem:[#allocation56_spill]] (%p54_p0)  ;;  %v338_v6 = vstv (%p54_p0), %s1318_s8  ;;  %v210_v27 = vmul.f32 (%p54_p0), %v208_v44, %v207_v7  ;;  %v182_v14 = vadd.f32 (%p54_p0), %v180_v20, %v165_v19  ;;  %v199_v17 = vadd.f32 (%p54_p0), %v192_v30, %v184_v21 }
  0x63   :  { %117 = sbr.rel (!%p54_p0) target bundleno = 180 (0xb4), region = 29  ;;  %s1969_s18 = sld [smem:[#allocation22_spill]] (%p54_p0)  ;;  %v353_v9 = vstv (%p54_p0), %s1320_s26  ;;  %v216_v31 = vmul.f32 (%p54_p0), %v1383_v13, %v215_v45  ;;  %v217_v38 = vmul.f32 (%p54_p0), %v1389_v18, %v215_v45  ;;  %v196_v41 = vadd.f32 (%p54_p0), %v194_v43, %v181_v24 }
  0x64   :  { %s1970_s17 = sld [smem:[#allocation39_spill]] (%p54_p0)  ;;  %s1971_s20 = sld [smem:[#allocation57_spill]] (%p54_p0)  ;;  %v213_v11 = vadd.f32 (%p54_p0), %v206_v10, %v198_v25  ;;  %v219_v12 = vmul.f32 (%p54_p0), %v1397_v23, %v218_v46  ;;  %v220_v44 = vmul.f32 (%p54_p0), %v1405_v28, %v218_v46  ;;  %v197_v15 = vadd.f32 (%p54_p0), %v195_v22, %v182_v14 }
  0x65   :  { %1963 = sst [smem:[#allocation60_spill]] %s1324_s25  ;;  %s1974_s13 = sld [smem:[#allocation58_spill]] (%p54_p0)  ;;  %v214_v16 = vadd.f32 (%p54_p0), %v207_v7, %v199_v17  ;;  %v231_v33 = vmul.f32 (%p54_p0), %v1383_v13, %v230_v48  ;;  %v232_v45 = vmul.f32 (%p54_p0), %v1389_v18, %v230_v48  ;;  %v211_v34 = vadd.f32 (%p54_p0), %v209_v26, %v196_v41 }
  0x66   :  { %1964 = sst [smem:[#allocation61_spill]] %s1326_s0  ;;  %s1976_s0 = sld [smem:[#allocation41_spill]] (%p54_p0)  ;;  %v221_v35 = vmin.f32 (%p54_p0), %v216_v31, %v219_v12  ;;  %v222_v10 = vmin.f32 (%p54_p0), %v217_v38, %v220_v44  ;;  %v212_v32 = vadd.f32 (%p54_p0), %v210_v27, %v197_v15 }
  0x67   :  { %1965 = sst [smem:[#allocation62_spill]] %s1328_s4  ;;  %s1975_s4 = sld [smem:[#allocation24_spill]] (%p54_p0) }
  0x68   :  { %1966 = sst [smem:[#allocation63_spill]] %s1330_s30  ;;  %s1973_s30 = sld [smem:[#allocation40_spill]] (%p54_p0)  ;;  %v233_v49 = vstv (%p54_p0), %s1968_s19  ;;  %v224_v37 = vmul.f32 (%p54_p0), %v223_v47, %v221_v35  ;;  %v225_v39 = vmul.f32 (%p54_p0), %v223_v47, %v222_v10  ;;  %v228_v42 = vadd.f32 (%p54_p0), %v221_v35, %v213_v11 }
  0x69   :  { %1967 = sst [smem:[#allocation64_spill]] %s1332_s29  ;;  %s1972_s29 = sld [smem:[#allocation23_spill]] (%p54_p0)  ;;  %v238_v50 = vstv (%p54_p0), %s1969_s18  ;;  %v234_v29 = vmul.f32 (%p54_p0), %v1397_v23, %v233_v49  ;;  %v235_v46 = vmul.f32 (%p54_p0), %v1405_v28, %v233_v49  ;;  %v229_v30 = vadd.f32 (%p54_p0), %v222_v10, %v214_v16 }
  0x6a   :  { %s1977_s21 = sld [smem:[#allocation59_spill]]  ;;  %s1978_s11 = sld [smem:[#allocation25_spill]]  ;;  %v245_v51 = vstv %s1970_s17  ;;  %v248_v52 = vstv %s1971_s20  ;;  %v226_v19 = vadd.f32 %v224_v37, %v211_v34 }
  0x6b   :  { %s1979_s22 = sld [smem:[#allocation42_spill]]  ;;  %s1981_s7 = sld [smem:[#allocation43_spill]]  ;;  %v263_v55 = vstv %s1974_s13  ;;  %v246_v7 = vmul.f32 %v1383_v13, %v245_v51  ;;  %v247_v48 = vmul.f32 %v1389_v18, %v245_v51  ;;  %v236_v36 = vmin.f32 %v231_v33, %v234_v29 }
  0x6c   :  { %s1980_s15 = sld [smem:[#allocation26_spill]]  ;;  %s1982_s16 = sld [smem:[#allocation27_spill]]  ;;  %v275_v57 = vstv %s1976_s0  ;;  %v237_v40 = vmin.f32 %v232_v45, %v235_v46  ;;  %v249_v49 = vmul.f32 %v1397_v23, %v248_v52  ;;  %v250_v43 = vmul.f32 %v1405_v28, %v248_v52 }
  0x6d   :  { %s1983_s6 = sld [smem:[#allocation44_spill]]  ;;  %s1985_s1 = sld [smem:[#allocation45_spill]]  ;;  %v268_v56 = vstv %s1975_s4  ;;  %v227_v51 = vadd.f32 %v225_v39, %v212_v32  ;;  %v239_v21 = vmul.f32 %v238_v50, %v236_v36  ;;  %v243_v24 = vadd.f32 %v236_v36, %v228_v42 }
  0x6e   :  { %s1984_s23 = sld [smem:[#allocation28_spill]]  ;;  %v260_v54 = vstv %s1973_s30  ;;  %s1986_s5 = sld [smem:[#allocation29_spill]]  ;;  %v240_v22 = vmul.f32 %v238_v50, %v237_v40  ;;  %v244_v25 = vadd.f32 %v237_v40, %v229_v30  ;;  %v251_v52 = vmin.f32 %v246_v7, %v249_v49 }
  0x6f   :  { %v253_v53 = vstv %s1972_s29  ;;  %s1987_s24 = sld [smem:[#allocation46_spill]]  ;;  %s1989_s14 = sld [smem:[#allocation47_spill]]  ;;  %v261_v47 = vmul.f32 %v1383_v13, %v260_v54  ;;  %v262_v20 = vmul.f32 %v1389_v18, %v260_v54  ;;  %v252_v26 = vmin.f32 %v247_v48, %v250_v43 }
  0x70   :  { %v278_v58 = vstv %s1977_s21  ;;  %s1988_s19 = sld [smem:[#allocation30_spill]]  ;;  %v283_v59 = vstv %s1978_s11  ;;  %s1991_s29 = sld [smem:[#allocation48_spill]]  ;;  %v264_v27 = vmul.f32 %v1397_v23, %v263_v55  ;;  %v265_v14 = vmul.f32 %v1405_v28, %v263_v55 }
  0x71   :  { %v290_v60 = vstv %s1979_s22  ;;  %v305_v63 = vstv %s1981_s7  ;;  %v241_v17 = vadd.f32 %v239_v21, %v226_v19  ;;  %v242_v54 = vadd.f32 %v240_v22, %v227_v51  ;;  %s2009_s22 = sld [smem:[#allocation61_spill]]  ;;  %s2025_s25 = sld [smem:[#allocation51_spill]] }
  0x72   :  { %v298_v62 = vstv %s1980_s15  ;;  %v313_v1 = vstv %s1982_s16  ;;  %v276_v50 = vmul.f32 %v1383_v13, %v275_v57  ;;  %v277_v31 = vmul.f32 %v1389_v18, %v275_v57  ;;  %s2026_s26 = sld [smem:[#allocation63_spill]]  ;;  %s2028_s27 = sld [smem:[#allocation52_spill]] }
  0x73   :  { %v320_v2 = vstv %s1983_s6  ;;  %v335_v5 = vstv %s1985_s1  ;;  %v254_v38 = vmul.f32 %v253_v53, %v251_v52  ;;  %v255_v41 = vmul.f32 %v253_v53, %v252_v26  ;;  %s2008_s1 = sld [smem:[#allocation49_spill]]  ;;  %s2029_s28 = sld [smem:[#allocation64_spill]] }
  0x74   :  { %v328_v4 = vstv %s1984_s23  ;;  %v258_v11 = vadd.f32 %v251_v52, %v243_v24  ;;  %v259_v12 = vadd.f32 %v252_v26, %v244_v25  ;;  %v266_v55 = vmin.f32 %v261_v47, %v264_v27  ;;  %s2014_s23 = sld [smem:[#allocation60_spill]]  ;;  %s2035_s30 = sld [smem:[#allocation34_spill]] }
  0x75   :  { %v350_v8 = vstv %s1987_s24  ;;  %v267_v44 = vmin.f32 %v262_v20, %v265_v14  ;;  %v279_v15 = vmul.f32 %v1397_v23, %v278_v58  ;;  %v280_v16 = vmul.f32 %v1405_v28, %v278_v58  ;;  %s2018_s24 = sld [smem:[#allocation62_spill]]  ;;  %s2037_s4 = sld [smem:[#allocation35_spill]] }
  0x76   :  { %v256_v33 = vadd.f32 %v254_v38, %v241_v17  ;;  %v257_v57 = vadd.f32 %v255_v41, %v242_v54  ;;  %v291_v53 = vmul.f32 %v1383_v13, %v290_v60  ;;  %v292_v45 = vmul.f32 %v1389_v18, %v290_v60  ;;  %s2038_s0 = sld [smem:[#allocation36_spill]] }
  0x77   :  { %v269_v34 = vmul.f32 %v268_v56, %v266_v55  ;;  %v270_v35 = vmul.f32 %v268_v56, %v267_v44  ;;  %v273_v10 = vadd.f32 %v266_v55, %v258_v11  ;;  %v274_v29 = vadd.f32 %v267_v44, %v259_v12 }
  0x78   :  { %v281_v58 = vmin.f32 %v276_v50, %v279_v15  ;;  %v282_v32 = vmin.f32 %v277_v31, %v280_v16  ;;  %v294_v46 = vmul.f32 %v1397_v23, %v293_v61  ;;  %v295_v7 = vmul.f32 %v1405_v28, %v293_v61 }
  0x79   :  { %v271_v48 = vadd.f32 %v269_v34, %v256_v33  ;;  %v272_v60 = vadd.f32 %v270_v35, %v257_v57  ;;  %v306_v56 = vmul.f32 %v1383_v13, %v305_v63  ;;  %v307_v37 = vmul.f32 %v1389_v18, %v305_v63 }
  0x7a   :  { %v284_v39 = vmul.f32 %v283_v59, %v281_v58  ;;  %v285_v42 = vmul.f32 %v283_v59, %v282_v32  ;;  %v288_v30 = vadd.f32 %v281_v58, %v273_v10  ;;  %v289_v36 = vadd.f32 %v282_v32, %v274_v29 }
  0x7b   :  { %v296_v61 = vmin.f32 %v291_v53, %v294_v46  ;;  %v297_v40 = vmin.f32 %v292_v45, %v295_v7  ;;  %v309_v49 = vmul.f32 %v1397_v23, %v308_v0  ;;  %v310_v43 = vmul.f32 %v1405_v28, %v308_v0 }
  0x7c   :  { %v286_v19 = vadd.f32 %v284_v39, %v271_v48  ;;  %v287_v63 = vadd.f32 %v285_v42, %v272_v60  ;;  %v321_v59 = vmul.f32 %v1383_v13, %v320_v2  ;;  %v322_v51 = vmul.f32 %v1389_v18, %v320_v2 }
  0x7d   :  { %v299_v47 = vmul.f32 %v298_v62, %v296_v61  ;;  %v300_v20 = vmul.f32 %v298_v62, %v297_v40  ;;  %v303_v21 = vadd.f32 %v296_v61, %v288_v30  ;;  %v304_v22 = vadd.f32 %v297_v40, %v289_v36 }
  0x7e   :  { %v311_v0 = vmin.f32 %v306_v56, %v309_v49  ;;  %v312_v24 = vmin.f32 %v307_v37, %v310_v43  ;;  %v324_v25 = vmul.f32 %v1397_v23, %v323_v3  ;;  %v325_v52 = vmul.f32 %v1405_v28, %v323_v3 }
  0x7f   :  { %v301_v26 = vadd.f32 %v299_v47, %v286_v19  ;;  %v302_v2 = vadd.f32 %v300_v20, %v287_v63  ;;  %v336_v62 = vmul.f32 %v1383_v13, %v335_v5  ;;  %v337_v27 = vmul.f32 %v1389_v18, %v335_v5 }
  0x80   :  { %v314_v14 = vmul.f32 %v313_v1, %v311_v0  ;;  %v315_v17 = vmul.f32 %v313_v1, %v312_v24  ;;  %v318_v54 = vadd.f32 %v311_v0, %v303_v21  ;;  %v319_v50 = vadd.f32 %v312_v24, %v304_v22 }
  0x81   :  { %v326_v3 = vmin.f32 %v321_v59, %v324_v25  ;;  %v327_v31 = vmin.f32 %v322_v51, %v325_v52  ;;  %v339_v38 = vmul.f32 %v1397_v23, %v338_v6  ;;  %v340_v41 = vmul.f32 %v1405_v28, %v338_v6 }
  0x82   :  { %v316_v11 = vadd.f32 %v314_v14, %v301_v26  ;;  %v317_v5 = vadd.f32 %v315_v17, %v302_v2  ;;  %v351_v1 = vmul.f32 %v1383_v13, %v350_v8  ;;  %v352_v12 = vmul.f32 %v1389_v18, %v350_v8 }
  0x83   :  { %v329_v55 = vmul.f32 %v328_v4, %v326_v3  ;;  %v330_v44 = vmul.f32 %v328_v4, %v327_v31  ;;  %v333_v15 = vadd.f32 %v326_v3, %v318_v54  ;;  %v334_v16 = vadd.f32 %v327_v31, %v319_v50 }
  0x84   :  { %v341_v6 = vmin.f32 %v336_v62, %v339_v38  ;;  %v342_v33 = vmin.f32 %v337_v27, %v340_v41  ;;  %v354_v57 = vmul.f32 %v1397_v23, %v353_v9  ;;  %v355_v53 = vmul.f32 %v1405_v28, %v353_v9 }
  0x85   :  { %v331_v8 = vadd.f32 %v329_v55, %v316_v11  ;;  %v332_v45 = vadd.f32 %v330_v44, %v317_v5  ;;  %v2010_v34 = vstv %s1989_s14  ;;  %v2012_v29 = vstv %s1986_s5  ;;  %s2017_s14 = sld [smem:[#allocation50_spill]] }
  0x86   :  { %v366_v4 = vmul.f32 %v1383_v13, %v2010_v34  ;;  %v2011_v35 = vmov %v2010_v34  ;;  %v344_v58 = vmul.f32 %v2012_v29, %v341_v6  ;;  %v2013_v32 = vmov %v2012_v29 }
  0x87   :  { %v367_v10 = vmul.f32 %v1389_v18, %v2011_v35  ;;  %v345_v46 = vmul.f32 %v2013_v32, %v342_v33  ;;  %v348_v7 = vadd.f32 %v341_v6, %v333_v15  ;;  %v349_v48 = vadd.f32 %v342_v33, %v334_v16 }
  0x88   :  { %v356_v9 = vmin.f32 %v351_v1, %v354_v57  ;;  %v357_v60 = vmin.f32 %v352_v12, %v355_v53  ;;  %v2015_v56 = vstv %s1322_s3  ;;  %v346_v30 = vadd.f32 %v344_v58, %v331_v8  ;;  %s2023_s3 = sld [smem:[#allocation31_spill]] }
  0x89   :  { %v369_v37 = vmul.f32 %v1397_v23, %v2015_v56  ;;  %v2016_v39 = vmov %v2015_v56  ;;  %v2019_v36 = vstv %s1991_s29  ;;  %v395_v40 = vstv %s2008_s1  ;;  %s2033_s29 = sld [smem:[#allocation33_spill]] }
  0x8a   :  { %v370_v42 = vmul.f32 %v1405_v28, %v2016_v39  ;;  %v381_v61 = vmul.f32 %v1383_v13, %v2019_v36  ;;  %v398_v49 = vstv %s2009_s22  ;;  %v2020_v43 = vstv %s1988_s19  ;;  %s2031_s19 = sld [smem:[#allocation32_spill]] }
  0x8b   :  { %v359_v19 = vmul.f32 %v2020_v43, %v356_v9  ;;  %v363_v63 = vadd.f32 %v356_v9, %v348_v7  ;;  %v364_v59 = vadd.f32 %v357_v60, %v349_v48  ;;  %v2021_v51 = vmov %v2019_v36 }
  0x8c   :  { %v382_v47 = vmul.f32 %v1389_v18, %v2021_v51  ;;  %v371_v20 = vmin.f32 %v366_v4, %v369_v37  ;;  %v372_v21 = vmin.f32 %v367_v10, %v370_v42  ;;  %v2022_v22 = vstv %s2014_s23 }
  0x8d   :  { %v384_v0 = vmul.f32 %v1397_v23, %v2022_v22  ;;  %v2024_v24 = vmov %v2022_v22  ;;  %v347_v52 = vadd.f32 %v345_v46, %v332_v45  ;;  %v2027_v26 = vmov %v2020_v43 }
  0x8e   :  { %v385_v25 = vmul.f32 %v1405_v28, %v2024_v24  ;;  %v360_v2 = vmul.f32 %v2027_v26, %v357_v60  ;;  %v410_v62 = vstv %s2017_s14  ;;  %v413_v27 = vstv %s2018_s24 }
  0x8f   :  { %v378_v14 = vadd.f32 %v371_v20, %v363_v63  ;;  %v379_v17 = vadd.f32 %v372_v21, %v364_v59  ;;  %v396_v54 = vmul.f32 %v1383_v13, %v395_v40  ;;  %v397_v50 = vmul.f32 %v1389_v18, %v395_v40 }
  0x90   :  { %v386_v3 = vmin.f32 %v381_v61, %v384_v0  ;;  %v387_v31 = vmin.f32 %v382_v47, %v385_v25  ;;  %v399_v38 = vmul.f32 %v1397_v23, %v398_v49  ;;  %v400_v41 = vmul.f32 %v1405_v28, %v398_v49 }
  0x91   :  { %v361_v11 = vadd.f32 %v359_v19, %v346_v30  ;;  %v2030_v5 = vstv %s2023_s3  ;;  %v425_v12 = vstv %s2025_s25  ;;  %v428_v55 = vstv %s2026_s26 }
  0x92   :  { %v374_v1 = vmul.f32 %v2030_v5, %v371_v20  ;;  %v393_v44 = vadd.f32 %v386_v3, %v378_v14  ;;  %v394_v15 = vadd.f32 %v387_v31, %v379_v17  ;;  %v411_v16 = vmul.f32 %v1383_v13, %v410_v62 }
  0x93   :  { %v412_v6 = vmul.f32 %v1389_v18, %v410_v62  ;;  %v401_v33 = vmin.f32 %v396_v54, %v399_v38  ;;  %v402_v57 = vmin.f32 %v397_v50, %v400_v41  ;;  %v414_v53 = vmul.f32 %v1397_v23, %v413_v27 }
  0x94   :  { %v415_v8 = vmul.f32 %v1405_v28, %v413_v27  ;;  %v362_v45 = vadd.f32 %v360_v2, %v347_v52  ;;  %v2032_v34 = vmov %v2030_v5  ;;  %v440_v35 = vstv %s2028_s27 }
  0x95   :  { %v375_v4 = vmul.f32 %v2032_v34, %v372_v21  ;;  %v443_v10 = vstv %s2029_s28  ;;  %v408_v29 = vadd.f32 %v401_v33, %v393_v44  ;;  %v409_v58 = vadd.f32 %v402_v57, %v394_v15 }
  0x96   :  { %v426_v32 = vmul.f32 %v1383_v13, %v425_v12  ;;  %v427_v46 = vmul.f32 %v1389_v18, %v425_v12  ;;  %v416_v7 = vmin.f32 %v411_v16, %v414_v53  ;;  %v417_v48 = vmin.f32 %v412_v6, %v415_v8 }
  0x97   :  { %v429_v9 = vmul.f32 %v1397_v23, %v428_v55  ;;  %v430_v60 = vmul.f32 %v1405_v28, %v428_v55  ;;  %v376_v56 = vadd.f32 %v374_v1, %v361_v11  ;;  %v2034_v37 = vstv %s2031_s19 }
  0x98   :  { %v389_v39 = vmul.f32 %v2034_v37, %v386_v3  ;;  %v423_v42 = vadd.f32 %v416_v7, %v408_v29  ;;  %v424_v30 = vadd.f32 %v417_v48, %v409_v58  ;;  %v441_v36 = vmul.f32 %v1383_v13, %v440_v35 }
  0x99   :  { %v442_v61 = vmul.f32 %v1389_v18, %v440_v35  ;;  %v431_v40 = vmin.f32 %v426_v32, %v429_v9  ;;  %v432_v49 = vmin.f32 %v427_v46, %v430_v60  ;;  %v444_v43 = vmul.f32 %v1397_v23, %v443_v10 }
  0x9a   :  { %v445_v19 = vmul.f32 %v1405_v28, %v443_v10  ;;  %v377_v63 = vadd.f32 %v375_v4, %v362_v45  ;;  %v2036_v59 = vmov %v2034_v37  ;;  %v403_v47 = vstv %s2033_s29 }
  0x9b   :  { %v390_v51 = vmul.f32 %v2036_v59, %v387_v31  ;;  %v438_v20 = vadd.f32 %v431_v40, %v423_v42  ;;  %v439_v21 = vadd.f32 %v432_v49, %v424_v30  ;;  %v446_v22 = vmin.f32 %v441_v36, %v444_v43 }
  0x9c   :  { %v447_v0 = vmin.f32 %v442_v61, %v445_v19  ;;  %v391_v24 = vadd.f32 %v389_v39, %v376_v56  ;;  %v404_v25 = vmul.f32 %v403_v47, %v401_v33  ;;  %v418_v13 = vstv %s2035_s30 }
  0x9d   :  { %v392_v18 = vadd.f32 %v390_v51, %v377_v63  ;;  %v405_v52 = vmul.f32 %v403_v47, %v402_v57  ;;  %v453_v26 = vadd.f32 %v446_v22, %v438_v20  ;;  %v419_v28 = vmul.f32 %v418_v13, %v416_v7 }
  0x9e   :  { %v454_v2 = vadd.f32 %v447_v0, %v439_v21  ;;  %v406_v23 = vadd.f32 %v404_v25, %v391_v24  ;;  %v420_v27 = vmul.f32 %v418_v13, %v417_v48  ;;  %v433_v14 = vstv %s2037_s4 }
  0x9f   :  { %980 = vrcp.f32 %v453_v26  ;;  %v407_v62 = vadd.f32 %v405_v52, %v392_v18  ;;  %v434_v54 = vmul.f32 %v433_v14, %v431_v40  ;;  %v435_v3 = vmul.f32 %v433_v14, %v432_v49 }
  0xa0   :  { %982 = vrcp.f32 %v454_v2  ;;  %v421_v17 = vadd.f32 %v419_v28, %v406_v23  ;;  %v448_v31 = vstv %s2038_s0 }
  0xa1   :  { %v422_v50 = vadd.f32 %v420_v27, %v407_v62  ;;  %v449_v41 = vmul.f32 %v448_v31, %v446_v22  ;;  %v450_v1 = vmul.f32 %v448_v31, %v447_v0 }
  0xa2   :  { %v436_v38 = vadd.f32 %v434_v54, %v421_v17 }
  0xa3   :  { %v437_v5 = vadd.f32 %v435_v3, %v422_v50 }
  0xa4   :  { %v451_v15 = vadd.f32 %v449_v41, %v436_v38 }
  0xa5   :  { %v452_v6 = vadd.f32 %v450_v1, %v437_v5 }
  0xa9   :  { %v981_v11 = vpop.eup %980 }
  0xaa   :  { %v983_v12 = vpop.eup %982  ;;  %v457_v55 = vmul.f32 %v981_v11, %v453_v26 }
  0xab   :  { %v458_v44 = vmul.f32 %v983_v12, %v454_v2 }
  0xac   :  { %v459_v16 = vsub.f32 2.0, %v457_v55 }
  0xad   :  { %v460_v33 = vsub.f32 2.0, %v458_v44 }
  0xae   :  { %v461_v57 = vmul.f32 %v981_v11, %v459_v16 }
  0xaf   :  { %v462_v53 = vmul.f32 %v983_v12, %v460_v33 }
  0xb0   :  { %v463_v8 = vmul.f32 %v461_v57, %v451_v15 }
  0xb1   :  { %v464_v45 = vmul.f32 %v462_v53, %v452_v6 }
  0xb2   :  { %465 = vst [vmem:[#allocation9] sm:$0xff] %v463_v8 }
  0xb3   :  { %466 = vst [vmem:[#allocation9 + $0x8] sm:$0xff] %v464_v45 }
  0xb4 PF:  { %469 = sbr.rel (%p54_p0) target bundleno = 308 (0x134), region = 33  ;;  %v470_v34 = vld [vmem:[#allocation8] sm:$0xff] (!%p54_p0)  ;;  %s2040_s7 = sld [smem:[#allocation14_spill]] (!%p54_p0)  ;;  %v471_v4 = vld [vmem:[#allocation8 + $0x8] sm:$0xff] (!%p54_p0)  ;;  %v543_v49 = vstv (!%p54_p0), %s1217_s2 }
  0xb5   :  { %s2041_s8 = sld [smem:[#allocation15_spill]] (!%p54_p0)  ;;  %s2042_s9 = sld [smem:[#allocation16_spill]] (!%p54_p0) }
  0xb6   :  { %s2043_s11 = sld [smem:[#allocation18_spill]] (!%p54_p0)  ;;  %s2044_s10 = sld [smem:[#allocation19_spill]] (!%p54_p0) }
  0xb7   :  { %s2045_s13 = sld [smem:[#allocation20_spill]] (!%p54_p0)  ;;  %s2046_s18 = sld [smem:[#allocation21_spill]] (!%p54_p0) }
  0xb8   :  { %s2047_s14 = sld [smem:[#allocation22_spill]] (!%p54_p0)  ;;  %s2048_s24 = sld [smem:[#allocation23_spill]] (!%p54_p0) }
  0xb9   :  { %s2049_s3 = sld [smem:[#allocation24_spill]] (!%p54_p0)  ;;  %s2050_s25 = sld [smem:[#allocation25_spill]] (!%p54_p0) }
  0xba   :  { %v472_v35 = vstv (!%p54_p0), %s2040_s7  ;;  %s2051_s26 = sld [smem:[#allocation26_spill]] (!%p54_p0)  ;;  %s2052_s5 = sld [smem:[#allocation27_spill]] (!%p54_p0) }
  0xbb   :  { %v477_v10 = vstv %s2041_s8  ;;  %s495_s6 = smul.f32 0.0, %s2042_s9  ;;  %v473_v29 = vsub.f32 %v470_v34, %v472_v35  ;;  %v474_v58 = vsub.f32 %v471_v4, %v472_v35  ;;  %v488_v37 = vstv %s2042_s9  ;;  %s2053_s7 = sld [smem:[#allocation28_spill]] }
  0xbc   :  { %s531_s15 = smul.f32 2.0, %s2042_s9  ;;  %v507_v42 = vstv %s2043_s11  ;;  %v524_v30 = vstv %s2044_s10  ;;  %s2054_s11 = sld [smem:[#allocation29_spill]] }
  0xbd   :  { %v1668_v32 = vmul.f32 5.0, %v473_v29  ;;  %v478_v46 = vmul.f32 %v477_v10, %v473_v29  ;;  %v479_v7 = vmul.f32 %v477_v10, %v474_v58  ;;  %v496_v48 = vstv %s495_s6  ;;  %s550_s16 = smul.f32 3.0, %s2042_s9  ;;  %s2055_s6 = sld [smem:[#allocation30_spill]] }
  0xbe   :  { %v1671_v9 = vmul.f32 5.0, %v474_v58  ;;  %s569_s12 = smul.f32 4.0, %s2042_s9  ;;  %v532_v40 = vstv %s531_s15  ;;  %v562_v63 = vstv %s2045_s13  ;;  %v581_v59 = vstv %s2046_s18  ;;  %s2057_s10 = sld [smem:[#allocation32_spill]] }
  0xbf   :  { %v480_v60 = vadd.f32 0.5, %v478_v46  ;;  %v481_v56 = vadd.f32 0.5, %v479_v7  ;;  %v497_v39 = vsub.f32 %v1668_v32, %v496_v48  ;;  %s588_s17 = smul.f32 5.0, %s2042_s9  ;;  %v551_v19 = vstv %s550_s16  ;;  %s2058_s15 = sld [smem:[#allocation33_spill]] }
  0xc0   :  { %s607_s20 = smul.f32 6.0, %s2042_s9  ;;  %v498_v43 = vsub.f32 %v1671_v9, %v496_v48  ;;  %v514_v20 = vsub.f32 %v1668_v32, %v488_v37  ;;  %v515_v21 = vsub.f32 %v1671_v9, %v488_v37  ;;  %v533_v0 = vsub.f32 %v1668_v32, %v532_v40  ;;  %s2059_s16 = sld [smem:[#allocation34_spill]] }
  0xc1   :  { %v482_v36 = vfloor.f32 %v480_v60  ;;  %v483_v61 = vfloor.f32 %v481_v56  ;;  %v499_v22 = vand.u32 2147483647, %v497_v39  ;;  %v534_v24 = vsub.f32 %v1671_v9, %v532_v40  ;;  %s626_s21 = smul.f32 7.0, %s2042_s9  ;;  %s2060_s13 = sld [smem:[#allocation35_spill]] }
  0xc2   :  { %v570_v25 = vstv %s569_s12  ;;  %v589_v52 = vstv %s588_s17  ;;  %v608_v26 = vstv %s607_s20  ;;  %v500_v2 = vand.u32 2147483647, %v498_v43  ;;  %s645_s1 = smul.f32 8.0, %s2042_s9  ;;  %s2061_s18 = sld [smem:[#allocation36_spill]] }
  0xc3   :  { %v484_v51 = vmax.f32 %v482_v36, 0.0  ;;  %v485_v47 = vmax.f32 %v483_v61, 0.0  ;;  %v552_v23 = vsub.f32 %v1668_v32, %v551_v19  ;;  %v553_v28 = vsub.f32 %v1671_v9, %v551_v19  ;;  %s664_s22 = smul.f32 9.0, %s2042_s9 }
  0xc4   :  { %v571_v62 = vsub.f32 %v1668_v32, %v570_v25  ;;  %v516_v17 = vand.u32 2147483647, %v514_v20  ;;  %v572_v54 = vsub.f32 %v1671_v9, %v570_v25  ;;  %v517_v50 = vand.u32 2147483647, %v515_v21  ;;  %s683_s23 = smul.f32 10.0, %s2042_s9 }
  0xc5   :  { %v486_v13 = vmin.f32 %v484_v51, 19.0  ;;  %v487_v18 = vmin.f32 %v485_v47, 19.0  ;;  %v590_v3 = vsub.f32 %v1668_v32, %v589_v52  ;;  %v591_v31 = vsub.f32 %v1671_v9, %v589_v52  ;;  %s702_s2 = smul.f32 11.0, %s2042_s9 }
  0xc6   :  { %v609_v38 = vsub.f32 %v1668_v32, %v608_v26  ;;  %v535_v5 = vand.u32 2147483647, %v533_v0  ;;  %v536_v1 = vand.u32 2147483647, %v534_v24  ;;  %v554_v12 = vand.u32 2147483647, %v552_v23 }
  0xc7   :  { %v489_v27 = vmul.f32 %v488_v37, %v486_v13  ;;  %v490_v14 = vmul.f32 %v488_v37, %v487_v18  ;;  %v555_v55 = vand.u32 2147483647, %v553_v28  ;;  %v573_v44 = vand.u32 2147483647, %v571_v62  ;;  %s721_s27 = smul.f32 12.0, %s2042_s9 }
  0xc8   :  { %v610_v15 = vsub.f32 %v1671_v9, %v608_v26  ;;  %v574_v33 = vand.u32 2147483647, %v572_v54  ;;  %v627_v57 = vstv %s626_s21  ;;  %v592_v53 = vand.u32 2147483647, %v590_v3  ;;  %s740_s28 = smul.f32 13.0, %s2042_s9 }
  0xc9   :  { %v491_v41 = vsub.f32 %v1668_v32, %v489_v27  ;;  %v492_v11 = vsub.f32 %v1671_v9, %v490_v14  ;;  %v593_v8 = vand.u32 2147483647, %v591_v31  ;;  %v611_v45 = vand.u32 2147483647, %v609_v38  ;;  %s759_s19 = smul.f32 14.0, %s2042_s9 }
  0xca   :  { %v646_v34 = vstv %s645_s1  ;;  %v628_v7 = vsub.f32 %v1668_v32, %v627_v57  ;;  %v629_v48 = vsub.f32 %v1671_v9, %v627_v57  ;;  %v612_v40 = vand.u32 2147483647, %v610_v15  ;;  %s778_s29 = smul.f32 15.0, %s2042_s9 }
  0xcb   :  { %v1701_v16 = vand.u32 2147483647, %v491_v41  ;;  %v1703_v6 = vand.u32 2147483647, %v492_v11  ;;  %v647_v43 = vsub.f32 %v1668_v32, %v646_v34  ;;  %v665_v52 = vstv %s664_s22  ;;  %s797_s30 = smul.f32 16.0, %s2042_s9 }
  0xcc   :  { %v630_v21 = vand.u32 2147483647, %v628_v7  ;;  %v631_v25 = vand.u32 2147483647, %v629_v48  ;;  %v666_v54 = vsub.f32 %v1668_v32, %v665_v52  ;;  %v684_v31 = vstv %s683_s23  ;;  %s816_s4 = smul.f32 17.0, %s2042_s9 }
  0xcd   :  { %v501_v4 = vsub.f32 %v1701_v16, %v499_v22  ;;  %v502_v35 = vsub.f32 %v1703_v6, %v500_v2  ;;  %v518_v10 = vsub.f32 %v1701_v16, %v516_v17  ;;  %v519_v29 = vsub.f32 %v1703_v6, %v517_v50  ;;  %s835_s0 = smul.f32 18.0, %s2042_s9 }
  0xce   :  { %v537_v58 = vsub.f32 %v1701_v16, %v535_v5  ;;  %v538_v46 = vsub.f32 %v1703_v6, %v536_v1  ;;  %v556_v39 = vsub.f32 %v1701_v16, %v554_v12  ;;  %v557_v61 = vsub.f32 %v1703_v6, %v555_v55  ;;  %s854_s8 = smul.f32 19.0, %s2042_s9  ;;  %s2056_s9 = sld [smem:[#allocation31_spill]] }
  0xcf   :  { %v503_v60 = vmul.f32 1.442695, %v501_v4  ;;  %v505_v56 = vmul.f32 1.442695, %v502_v35  ;;  %v520_v37 = vmul.f32 1.442695, %v518_v10  ;;  %v575_v51 = vsub.f32 %v1701_v16, %v573_v44 }
  0xd0   :  { %v522_v36 = vmul.f32 1.442695, %v519_v29  ;;  %v539_v19 = vmul.f32 1.442695, %v537_v58  ;;  %v576_v47 = vsub.f32 %v1703_v6, %v574_v33  ;;  %v541_v20 = vmul.f32 1.442695, %v538_v46 }
  0xd1   :  { %984 = vpow2.f32 %v503_v60  ;;  %v648_v22 = vsub.f32 %v1671_v9, %v646_v34  ;;  %v558_v0 = vmul.f32 1.442695, %v556_v39  ;;  %v594_v24 = vsub.f32 %v1701_v16, %v592_v53 }
  0xd2   :  { %986 = vpow2.f32 %v505_v56  ;;  %v560_v13 = vmul.f32 1.442695, %v557_v61  ;;  %v595_v18 = vsub.f32 %v1703_v6, %v593_v8  ;;  %v577_v26 = vmul.f32 1.442695, %v575_v51 }
  0xd3   :  { %988 = vpow2.f32 %v520_v37  ;;  %v579_v2 = vmul.f32 1.442695, %v576_v47  ;;  %v613_v23 = vsub.f32 %v1701_v16, %v611_v45  ;;  %v614_v28 = vsub.f32 %v1703_v6, %v612_v40 }
  0xd4   :  { %990 = vpow2.f32 %v522_v36  ;;  %v649_v62 = vand.u32 2147483647, %v647_v43  ;;  %v650_v27 = vand.u32 2147483647, %v648_v22  ;;  %v596_v14 = vmul.f32 1.442695, %v594_v24 }
  0xd5   :  { %992 = vpow2.f32 %v539_v19  ;;  %v632_v17 = vsub.f32 %v1701_v16, %v630_v21  ;;  %v598_v50 = vmul.f32 1.442695, %v595_v18  ;;  %v633_v3 = vsub.f32 %v1703_v6, %v631_v25 }
  0xd6   :  { %994 = vpow2.f32 %v541_v20  ;;  %v600_v38 = vstv %s2047_s14  ;;  %v651_v41 = vsub.f32 %v1701_v16, %v649_v62  ;;  %v667_v11 = vsub.f32 %v1671_v9, %v665_v52 }
  0xd7   :  { %996 = vpow2.f32 %v558_v0  ;;  %v615_v5 = vmul.f32 1.442695, %v613_v23  ;;  %v619_v1 = vstv %s2048_s24  ;;  %v652_v12 = vsub.f32 %v1703_v6, %v650_v27 }
  0xd8   :  { %998 = vpow2.f32 %v560_v13  ;;  %v617_v44 = vmul.f32 1.442695, %v614_v28  ;;  %v668_v15 = vand.u32 2147483647, %v666_v54  ;;  %v685_v33 = vsub.f32 %v1668_v32, %v684_v31 }
  0xd9   :  { %1000 = vpow2.f32 %v577_v26  ;;  %v634_v8 = vmul.f32 1.442695, %v632_v17  ;;  %v636_v45 = vmul.f32 1.442695, %v633_v3  ;;  %v653_v35 = vmul.f32 1.442695, %v651_v41 }
  0xda   :  { %1002 = vpow2.f32 %v579_v2  ;;  %v669_v10 = vand.u32 2147483647, %v667_v11  ;;  %v686_v29 = vsub.f32 %v1671_v9, %v684_v31  ;;  %v655_v48 = vmul.f32 1.442695, %v652_v12 }
  0xdb   :  { %v985_v55 = vpop.eup %984  ;;  %1004 = vpow2.f32 %v596_v14  ;;  %v670_v39 = vsub.f32 %v1701_v16, %v668_v15  ;;  %v703_v12 = vstv %s702_s2 }
  0xdc   :  { %v987_v57 = vpop.eup %986  ;;  %v508_v53 = vmul.f32 %v985_v55, %v507_v42  ;;  %1006 = vpow2.f32 %v598_v50  ;;  %v688_v26 = vand.u32 2147483647, %v686_v29 }
  0xdd   :  { %v989_v34 = vpop.eup %988  ;;  %v509_v4 = vmul.f32 %v987_v57, %v507_v42  ;;  %1008 = vpow2.f32 %v615_v5  ;;  %v687_v42 = vand.u32 2147483647, %v685_v33  ;;  %v672_v31 = vmul.f32 1.442695, %v670_v39 }
  0xde   :  { %v991_v58 = vpop.eup %990  ;;  %v525_v46 = vmul.f32 %v989_v34, %v524_v30  ;;  %v529_v7 = vadd.f32 %v989_v34, %v985_v55  ;;  %1010 = vpow2.f32 %v617_v44  ;;  %v638_v44 = vstv %s2049_s3 }
  0xdf   :  { %v993_v60 = vpop.eup %992  ;;  %v526_v56 = vmul.f32 %v991_v58, %v524_v30  ;;  %v530_v37 = vadd.f32 %v991_v58, %v987_v57  ;;  %v671_v30 = vsub.f32 %v1703_v6, %v669_v10  ;;  %1012 = vpow2.f32 %v634_v8 }
  0xe0   :  { %v995_v36 = vpop.eup %994  ;;  %v527_v61 = vadd.f32 %v525_v46, %v508_v53  ;;  %v544_v40 = vmul.f32 %v993_v60, %v543_v49  ;;  %v548_v43 = vadd.f32 %v993_v60, %v529_v7  ;;  %1014 = vpow2.f32 %v636_v45 }
  0xe1   :  { %v997_v19 = vpop.eup %996  ;;  %v528_v51 = vadd.f32 %v526_v56, %v509_v4  ;;  %v545_v47 = vmul.f32 %v995_v36, %v543_v49  ;;  %v549_v20 = vadd.f32 %v995_v36, %v530_v37  ;;  %v689_v54 = vsub.f32 %v1701_v16, %v687_v42 }
  0xe2   :  { %v999_v21 = vpop.eup %998  ;;  %v546_v22 = vadd.f32 %v544_v40, %v527_v61  ;;  %v563_v0 = vmul.f32 %v997_v19, %v562_v63  ;;  %v567_v24 = vadd.f32 %v997_v19, %v548_v43  ;;  %1016 = vpow2.f32 %v653_v35 }
  0xe3   :  { %v1001_v25 = vpop.eup %1000  ;;  %v547_v13 = vadd.f32 %v545_v47, %v528_v51  ;;  %v564_v18 = vmul.f32 %v999_v21, %v562_v63  ;;  %v568_v52 = vadd.f32 %v999_v21, %v549_v20  ;;  %1018 = vpow2.f32 %v655_v48 }
  0xe4   :  { %v1003_v49 = vpop.eup %1002  ;;  %v565_v2 = vadd.f32 %v563_v0, %v546_v22  ;;  %v582_v23 = vmul.f32 %v1001_v25, %v581_v59  ;;  %v586_v28 = vadd.f32 %v1001_v25, %v567_v24  ;;  %v690_v33 = vsub.f32 %v1703_v6, %v688_v26 }
  0xe5   :  { %v1005_v62 = vpop.eup %1004  ;;  %v566_v27 = vadd.f32 %v564_v18, %v547_v13  ;;  %v583_v14 = vmul.f32 %v1003_v49, %v581_v59  ;;  %v587_v17 = vadd.f32 %v1003_v49, %v568_v52  ;;  %v674_v59 = vmul.f32 1.442695, %v671_v30 }
  0xe6   :  { %v1007_v63 = vpop.eup %1006  ;;  %v584_v50 = vadd.f32 %v582_v23, %v565_v2  ;;  %v601_v3 = vmul.f32 %v1005_v62, %v600_v38  ;;  %v605_v5 = vadd.f32 %v1005_v62, %v586_v28  ;;  %v691_v57 = vmul.f32 1.442695, %v689_v54 }
  0xe7   :  { %v585_v41 = vadd.f32 %v583_v14, %v566_v27  ;;  %v602_v11 = vmul.f32 %v1007_v63, %v600_v38  ;;  %v1009_v55 = vpop.eup %1008  ;;  %v606_v15 = vadd.f32 %v1007_v63, %v587_v17  ;;  %v704_v53 = vsub.f32 %v1668_v32, %v703_v12 }
  0xe8   :  { %v1011_v8 = vpop.eup %1010  ;;  %v603_v45 = vadd.f32 %v601_v3, %v584_v50  ;;  %v620_v34 = vmul.f32 %v1009_v55, %v619_v1  ;;  %1020 = vpow2.f32 %v672_v31  ;;  %v705_v38 = vsub.f32 %v1671_v9, %v703_v12 }
  0xe9   :  { %v604_v4 = vadd.f32 %v602_v11, %v585_v41  ;;  %v621_v35 = vmul.f32 %v1011_v8, %v619_v1  ;;  %v624_v10 = vadd.f32 %v1009_v55, %v605_v5  ;;  %v706_v29 = vand.u32 2147483647, %v704_v53  ;;  %v1013_v58 = vpop.eup %1012 }
  0xea   :  { %v657_v46 = vstv %s2050_s25  ;;  %v707_v7 = vand.u32 2147483647, %v705_v38  ;;  %v625_v48 = vadd.f32 %v1011_v8, %v606_v15  ;;  %1022 = vpow2.f32 %v674_v59  ;;  %v1015_v37 = vpop.eup %1014 }
  0xeb   :  { %v693_v60 = vmul.f32 1.442695, %v690_v33  ;;  %v708_v56 = vsub.f32 %v1701_v16, %v706_v29  ;;  %v622_v39 = vadd.f32 %v620_v34, %v603_v45  ;;  %v639_v42 = vmul.f32 %v1013_v58, %v638_v44 }
  0xec   :  { %1024 = vpow2.f32 %v691_v57  ;;  %v709_v1 = vsub.f32 %v1703_v6, %v707_v7  ;;  %v623_v36 = vadd.f32 %v621_v35, %v604_v4  ;;  %v640_v61 = vmul.f32 %v1015_v37, %v638_v44  ;;  %v1017_v19 = vpop.eup %1016 }
  0xed   :  { %v643_v40 = vadd.f32 %v1013_v58, %v624_v10  ;;  %v710_v43 = vmul.f32 1.442695, %v708_v56  ;;  %v676_v51 = vstv %s2051_s26  ;;  %v644_v47 = vadd.f32 %v1015_v37, %v625_v48  ;;  %v1019_v21 = vpop.eup %1018 }
  0xee   :  { %1026 = vpow2.f32 %v693_v60  ;;  %v712_v20 = vmul.f32 1.442695, %v709_v1  ;;  %v722_v30 = vstv %s721_s27  ;;  %v641_v22 = vadd.f32 %v639_v42, %v622_v39 }
  0xef   :  { %v658_v0 = vmul.f32 %v1017_v19, %v657_v46  ;;  %v723_v24 = vsub.f32 %v1668_v32, %v722_v30  ;;  %v724_v25 = vsub.f32 %v1671_v9, %v722_v30  ;;  %v642_v13 = vadd.f32 %v640_v61, %v623_v36 }
  0xf0   :  { %v662_v18 = vadd.f32 %v1017_v19, %v643_v40  ;;  %1028 = vpow2.f32 %v710_v43  ;;  %v741_v52 = vstv %s740_s28  ;;  %v659_v62 = vmul.f32 %v1019_v21, %v657_v46 }
  0xf1   :  { %v725_v49 = vand.u32 2147483647, %v723_v24  ;;  %v726_v2 = vand.u32 2147483647, %v724_v25  ;;  %v742_v23 = vsub.f32 %v1668_v32, %v741_v52  ;;  %v743_v28 = vsub.f32 %v1671_v9, %v741_v52 }
  0xf2   :  { %v1021_v26 = vpop.eup %1020  ;;  %v663_v27 = vadd.f32 %v1019_v21, %v644_v47  ;;  %1030 = vpow2.f32 %v712_v20  ;;  %v760_v14 = vstv %s759_s19  ;;  %v779_v5 = vstv %s778_s29 }
  0xf3   :  { %v727_v17 = vsub.f32 %v1701_v16, %v725_v49  ;;  %v728_v54 = vsub.f32 %v1703_v6, %v726_v2  ;;  %v744_v63 = vand.u32 2147483647, %v742_v23  ;;  %v745_v50 = vand.u32 2147483647, %v743_v28 }
  0xf4   :  { %v1023_v3 = vpop.eup %1022  ;;  %v681_v31 = vadd.f32 %v1021_v26, %v662_v18  ;;  %v761_v41 = vsub.f32 %v1668_v32, %v760_v14  ;;  %v762_v11 = vsub.f32 %v1671_v9, %v760_v14  ;;  %v780_v53 = vsub.f32 %v1668_v32, %v779_v5 }
  0xf5   :  { %v729_v55 = vmul.f32 1.442695, %v727_v17  ;;  %v731_v44 = vmul.f32 1.442695, %v728_v54  ;;  %v746_v59 = vsub.f32 %v1701_v16, %v744_v63  ;;  %v747_v15 = vsub.f32 %v1703_v6, %v745_v50 }
  0xf6   :  { %v1787_v12 = vpop.eup %1024  ;;  %v763_v33 = vand.u32 2147483647, %v761_v41  ;;  %v764_v57 = vand.u32 2147483647, %v762_v11  ;;  %v781_v8 = vsub.f32 %v1671_v9, %v779_v5  ;;  %v682_v45 = vadd.f32 %v1023_v3, %v663_v27 }
  0xf7   :  { %1032 = vpow2.f32 %v729_v55  ;;  %v748_v34 = vmul.f32 1.442695, %v746_v59  ;;  %v750_v38 = vmul.f32 1.442695, %v747_v15  ;;  %v782_v29 = vand.u32 2147483647, %v780_v53 }
  0xf8   :  { %v1027_v4 = vpop.eup %1026  ;;  %1034 = vpow2.f32 %v731_v44  ;;  %v765_v35 = vsub.f32 %v1701_v16, %v763_v33  ;;  %v766_v10 = vsub.f32 %v1703_v6, %v764_v57  ;;  %v700_v58 = vadd.f32 %v1787_v12, %v681_v31 }
  0xf9   :  { %1036 = vpow2.f32 %v748_v34  ;;  %v783_v46 = vand.u32 2147483647, %v781_v8  ;;  %v798_v7 = vstv %s797_s30  ;;  %v660_v60 = vadd.f32 %v658_v0, %v641_v22 }
  0xfa   :  { %v1797_v48 = vpop.eup %1028  ;;  %1038 = vpow2.f32 %v750_v38  ;;  %v767_v56 = vmul.f32 1.442695, %v765_v35  ;;  %v701_v37 = vadd.f32 %v1027_v4, %v682_v45  ;;  %v769_v39 = vmul.f32 1.442695, %v766_v10 }
  0xfb   :  { %v784_v42 = vsub.f32 %v1701_v16, %v782_v29  ;;  %v785_v1 = vsub.f32 %v1703_v6, %v783_v46  ;;  %v661_v61 = vadd.f32 %v659_v62, %v642_v13  ;;  %v677_v40 = vmul.f32 %v1021_v26, %v676_v51 }
  0xfc   :  { %v1031_v36 = vpop.eup %1030  ;;  %v799_v43 = vsub.f32 %v1668_v32, %v798_v7  ;;  %v800_v19 = vsub.f32 %v1671_v9, %v798_v7  ;;  %v719_v47 = vadd.f32 %v1797_v48, %v700_v58  ;;  %1040 = vpow2.f32 %v767_v56 }
  0xfd   :  { %v786_v20 = vmul.f32 1.442695, %v784_v42  ;;  %v788_v30 = vmul.f32 1.442695, %v785_v1  ;;  %1042 = vpow2.f32 %v769_v39  ;;  %v817_v0 = vstv %s816_s4 }
  0xfe   :  { %v801_v21 = vand.u32 2147483647, %v799_v43  ;;  %v802_v22 = vand.u32 2147483647, %v800_v19  ;;  %v720_v24 = vadd.f32 %v1031_v36, %v701_v37  ;;  %v818_v25 = vsub.f32 %v1668_v32, %v817_v0 }
  0xff   :  { %v819_v13 = vsub.f32 %v1671_v9, %v817_v0  ;;  %v836_v18 = vstv %s835_s0  ;;  %v678_v52 = vmul.f32 %v1023_v3, %v676_v51  ;;  %1044 = vpow2.f32 %v786_v20 }
 0x100   :  { %v803_v26 = vsub.f32 %v1701_v16, %v801_v21  ;;  %v804_v49 = vsub.f32 %v1703_v6, %v802_v22  ;;  %v695_v23 = vstv %s2052_s5  ;;  %1046 = vpow2.f32 %v788_v30 }
 0x101   :  { %v1033_v2 = vpop.eup %1032  ;;  %v820_v28 = vand.u32 2147483647, %v818_v25  ;;  %v821_v62 = vand.u32 2147483647, %v819_v13  ;;  %v837_v63 = vsub.f32 %v1668_v32, %v836_v18  ;;  %v838_v41 = vsub.f32 %v1671_v9, %v836_v18 }
 0x102   :  { %v1035_v27 = vpop.eup %1034  ;;  %v738_v14 = vadd.f32 %v1033_v2, %v719_v47  ;;  %v805_v17 = vmul.f32 1.442695, %v803_v26  ;;  %v807_v54 = vmul.f32 1.442695, %v804_v49  ;;  %v679_v5 = vadd.f32 %v677_v40, %v660_v60 }
 0x103   :  { %v1037_v50 = vpop.eup %1036  ;;  %v739_v51 = vadd.f32 %v1035_v27, %v720_v24  ;;  %v822_v3 = vsub.f32 %v1701_v16, %v820_v28  ;;  %v823_v31 = vsub.f32 %v1703_v6, %v821_v62  ;;  %v680_v55 = vadd.f32 %v678_v52, %v661_v61 }
 0x104   :  { %v1039_v11 = vpop.eup %1038  ;;  %v696_v44 = vmul.f32 %v1787_v12, %v695_v23  ;;  %v697_v59 = vmul.f32 %v1027_v4, %v695_v23  ;;  %v714_v15 = vstv %s2053_s7  ;;  %v757_v33 = vadd.f32 %v1037_v50, %v738_v14 }
 0x105   :  { %1048 = vpow2.f32 %v805_v17  ;;  %v824_v57 = vmul.f32 1.442695, %v822_v3  ;;  %v826_v53 = vmul.f32 1.442695, %v823_v31  ;;  %v839_v8 = vand.u32 2147483647, %v837_v63 }
 0x106   :  { %1050 = vpow2.f32 %v807_v54  ;;  %v1041_v45 = vpop.eup %1040  ;;  %v758_v34 = vadd.f32 %v1039_v11, %v739_v51  ;;  %v840_v38 = vand.u32 2147483647, %v838_v41  ;;  %v698_v10 = vadd.f32 %v696_v44, %v679_v5 }
 0x107   :  { %v1043_v35 = vpop.eup %1042  ;;  %v699_v29 = vadd.f32 %v697_v59, %v680_v55  ;;  %v715_v58 = vmul.f32 %v1797_v48, %v714_v15  ;;  %v841_v12 = vsub.f32 %v1701_v16, %v839_v8  ;;  %v716_v4 = vmul.f32 %v1031_v36, %v714_v15 }
 0x108   :  { %1052 = vpow2.f32 %v824_v57  ;;  %v842_v46 = vsub.f32 %v1703_v6, %v840_v38  ;;  %v855_v7 = vstv %s854_s8  ;;  %v733_v56 = vstv %s2054_s11 }
 0x109   :  { %v1045_v60 = vpop.eup %1044  ;;  %v776_v37 = vadd.f32 %v1041_v45, %v757_v33  ;;  %1054 = vpow2.f32 %v826_v53  ;;  %v843_v39 = vmul.f32 1.442695, %v841_v12  ;;  %v777_v1 = vadd.f32 %v1043_v35, %v758_v34 }
 0x10a   :  { %v1047_v42 = vpop.eup %1046  ;;  %v845_v61 = vmul.f32 1.442695, %v842_v46  ;;  %v856_v40 = vsub.f32 %v1668_v32, %v855_v7  ;;  %v717_v43 = vadd.f32 %v715_v58, %v698_v10  ;;  %v752_v48 = vstv %s2055_s6 }
 0x10b   :  { %v857_v19 = vsub.f32 %v1671_v9, %v855_v7  ;;  %v718_v36 = vadd.f32 %v716_v4, %v699_v29  ;;  %v734_v47 = vmul.f32 %v1033_v2, %v733_v56  ;;  %1056 = vpow2.f32 %v843_v39 }
 0x10c   :  { %v858_v20 = vand.u32 2147483647, %v856_v40  ;;  %v735_v30 = vmul.f32 %v1035_v27, %v733_v56  ;;  %v795_v21 = vadd.f32 %v1045_v60, %v776_v37  ;;  %1058 = vpow2.f32 %v845_v61 }
 0x10d   :  { %v859_v22 = vand.u32 2147483647, %v857_v19  ;;  %v796_v24 = vadd.f32 %v1047_v42, %v777_v1  ;;  %v736_v18 = vadd.f32 %v734_v47, %v717_v43  ;;  %v753_v52 = vmul.f32 %v1037_v50, %v752_v48 }
 0x10e   :  { %v860_v25 = vsub.f32 %v1701_v16, %v858_v20  ;;  %v771_v9 = vstv %s2056_s9  ;;  %v737_v49 = vadd.f32 %v735_v30, %v718_v36  ;;  %v754_v2 = vmul.f32 %v1039_v11, %v752_v48 }
 0x10f   :  { %v1049_v0 = vpop.eup %1048  ;;  %v861_v32 = vsub.f32 %v1703_v6, %v859_v22  ;;  %v755_v17 = vadd.f32 %v753_v52, %v736_v18  ;;  %v772_v16 = vmul.f32 %v1041_v45, %v771_v9  ;;  %v773_v63 = vmul.f32 %v1043_v35, %v771_v9 }
 0x110   :  { %v1051_v13 = vpop.eup %1050  ;;  %v862_v26 = vmul.f32 1.442695, %v860_v25  ;;  %v814_v23 = vadd.f32 %v1049_v0, %v795_v21  ;;  %v756_v54 = vadd.f32 %v754_v2, %v737_v49  ;;  %v790_v6 = vstv %s2057_s10 }
 0x111   :  { %v864_v28 = vmul.f32 1.442695, %v861_v32  ;;  %v815_v27 = vadd.f32 %v1051_v13, %v796_v24  ;;  %v774_v41 = vadd.f32 %v772_v16, %v755_v17  ;;  %v791_v11 = vmul.f32 %v1045_v60, %v790_v6 }
 0x112   :  { %v1053_v62 = vpop.eup %1052  ;;  %1060 = vpow2.f32 %v862_v26  ;;  %v775_v5 = vadd.f32 %v773_v63, %v756_v54  ;;  %v792_v55 = vmul.f32 %v1047_v42, %v790_v6  ;;  %v809_v44 = vstv %s2058_s15 }
 0x113   :  { %v1055_v14 = vpop.eup %1054  ;;  %1062 = vpow2.f32 %v864_v28  ;;  %v833_v51 = vadd.f32 %v1053_v62, %v814_v23  ;;  %v793_v57 = vadd.f32 %v791_v11, %v774_v41  ;;  %v810_v53 = vmul.f32 %v1049_v0, %v809_v44 }
 0x114   :  { %v834_v3 = vadd.f32 %v1055_v14, %v815_v27  ;;  %v794_v45 = vadd.f32 %v792_v55, %v775_v5  ;;  %v811_v34 = vmul.f32 %v1051_v13, %v809_v44  ;;  %v828_v38 = vstv %s2059_s16 }
 0x115   :  { %v1057_v50 = vpop.eup %1056  ;;  %v812_v29 = vadd.f32 %v810_v53, %v793_v57  ;;  %v829_v58 = vmul.f32 %v1053_v62, %v828_v38  ;;  %v830_v4 = vmul.f32 %v1055_v14, %v828_v38  ;;  %v847_v46 = vstv %s2060_s13 }
 0x116   :  { %v1059_v31 = vpop.eup %1058  ;;  %v852_v59 = vadd.f32 %v1057_v50, %v833_v51  ;;  %v813_v12 = vadd.f32 %v811_v34, %v794_v45  ;;  %v848_v60 = vmul.f32 %v1057_v50, %v847_v46  ;;  %v866_v39 = vstv %s2061_s18 }
 0x117   :  { %v853_v15 = vadd.f32 %v1059_v31, %v834_v3  ;;  %v831_v7 = vadd.f32 %v829_v58, %v812_v29  ;;  %v849_v37 = vmul.f32 %v1059_v31, %v847_v46 }
 0x118   :  { %v832_v56 = vadd.f32 %v830_v4, %v813_v12 }
 0x119   :  { %v850_v42 = vadd.f32 %v848_v60, %v831_v7 }
 0x11a   :  { %v851_v40 = vadd.f32 %v849_v37, %v832_v56 }
 0x11c   :  { %v1061_v33 = vpop.eup %1060 }
 0x11d   :  { %v1063_v8 = vpop.eup %1062  ;;  %v871_v35 = vadd.f32 %v1061_v33, %v852_v59  ;;  %v867_v1 = vmul.f32 %v1061_v33, %v866_v39 }
 0x11e   :  { %v872_v10 = vadd.f32 %v1063_v8, %v853_v15  ;;  %v868_v43 = vmul.f32 %v1063_v8, %v866_v39 }
 0x11f   :  { %1064 = vrcp.f32 %v871_v35  ;;  %v869_v47 = vadd.f32 %v867_v1, %v850_v42 }
 0x120   :  { %1066 = vrcp.f32 %v872_v10  ;;  %v870_v30 = vadd.f32 %v868_v43, %v851_v40 }
 0x129   :  { %v1065_v61 = vpop.eup %1064 }
 0x12a   :  { %v1067_v48 = vpop.eup %1066  ;;  %v875_v19 = vmul.f32 %v1065_v61, %v871_v35 }
 0x12b   :  { %v876_v36 = vmul.f32 %v1067_v48, %v872_v10 }
 0x12c   :  { %v877_v20 = vsub.f32 2.0, %v875_v19 }
 0x12d   :  { %v878_v21 = vsub.f32 2.0, %v876_v36 }
 0x12e   :  { %v879_v22 = vmul.f32 %v1065_v61, %v877_v20 }
 0x12f   :  { %v880_v0 = vmul.f32 %v1067_v48, %v878_v21 }
 0x130   :  { %v881_v24 = vmul.f32 %v879_v22, %v869_v47 }
 0x131   :  { %v882_v25 = vmul.f32 %v880_v0, %v870_v30 }
 0x132   :  { %883 = vst [vmem:[#allocation9] sm:$0xff] %v881_v24 }
 0x133   :  { %884 = vst [vmem:[#allocation9 + $0x8] sm:$0xff] %v882_v25 }
 0x134 PF:  { %s1145_s12 = smov [#allocation9]  }
 0x135   :  { %s890_s17 = sshll.u32 %s1145_s12, 4  ;;  %s891_s17 = int_to_ptr.vmem [resolvable:$true] %s890_s17 }
 0x136   :  { %s1110_s20 = scalar_lea.vmem %s891_s17, 256  ;;  %p1115_p2 = scmp.lt.s32.totalorder %s891_s17, %s891_s17 }
 0x137   :  { %p1111_p1 = scmp.ne.s32.totalorder %s891_s17, %s1110_s20  ;;  %p1116_p3 = scmp.lt.s32.totalorder %s1110_s20, %s1110_s20 }
 0x139   :  { %p1117_p4 = por %p1116_p3, %p1115_p2 }
 0x13b   :  { %p1118_p5 = pnand %p1117_p4, %p1111_p1 }
 0x13d   :  { %1121 = shalt.err (!%p1118_p5)
}
 0x13e   :  { %s2062_s22 = sld [smem:[#allocation65_spill]] }
 0x144   :  { %s1122_s23 = scalar_lea.hbm %s2062_s22, 256 }
 0x145   :  { %p1123_p6 = scmp.ne.s32.totalorder %s2062_s22, %s1122_s23  ;;  %p1126_p7 = scmp.lt.u32.totalorder %s1122_s23, %s2062_s22 }
 0x147   :  { %p1128_p8 = pnand %p1126_p7, %p1123_p6 }
 0x149   :  { %1131 = shalt.err (!%p1128_p8)
}
 0x14a   :  { %s2063_s25 = smov 8   ;;  %s2064_s26 = smov 128  }
 0x14b   :  { %896 = dma.vmem_to_hbm [thread:$0]  %s891_s17, 256, %s2062_s22, [#allocation4], %s2064_s26, %s2064_s26, %s2063_s25  }
 0x14c   :  { %1138 = dma.done.wait [#allocation4], 256  }
 0x14d   :  { %1139 = vsyncadd [#allocation4], 4294967040 }
 0x14e   :  { %900 = vsyncpa [#allocation3], 1 }
 0x14f   :  { %901 = vsyncpa [#allocation4], 1 }
 0x150   :  { %902 = vsyncpa [#allocation5], 1 }
 0x151   :  { %903 = vsyncpa [#allocation7], 1 }

</bundles_post_ra>
